<compile_context>
chip_gen: v6e
topology: v6e:2x2x1
jax: 0.10.0
libtpu: 0.0.40
codegen_flags: <defaults>
</compile_context>

<pallas_src>
import jax
import jax.numpy as jnp
from jax.experimental import pallas as pl
from jax.experimental.pallas import tpu as pltpu

# ----------------------------- config ---------------------------------------
VOCAB = 100
VOCAB_PAD = 128        # lane-dense one-hot / padded embedding table width
MAX_POS = 16
SEQ = 8                # sequence length this kernel is specialized for
HIDDEN = 32
NUM_HEADS = 2
HEAD_DIM = HIDDEN // NUM_HEADS
FFN = 64
NUM_LAYERS = 2
NUM_CLASSES = 2
CLS_PAD = 128          # lane-dense classifier output width (sliced to 2 outside)
LN_EPS = 1e-12
NEG_INF = -1e9

# slab_h row layout (all rows are HIDDEN lanes wide)
R_WORD = 0                       # [0, VOCAB_PAD): padded word embedding table
R_POS = VOCAB_PAD                # [R_POS, R_POS+SEQ): pos_emb + type_emb[0]
R_EMB_G = R_POS + SEQ            # embedding LayerNorm gamma
R_EMB_B = R_EMB_G + 1            # embedding LayerNorm beta
R_LAYER0 = R_EMB_B + 1           # per-layer vector rows start here
ROWS_PER_LAYER = 6               # b_o, ln1_g, ln1_b, b_ffn2, ln2_g, ln2_b
SLAB_ROWS = R_LAYER0 + ROWS_PER_LAYER * NUM_LAYERS


# ----------------------------- fused kernel ---------------------------------
def _fused_forward_kernel(
    ids_ref,        # (1, SEQ, 1)  int32, this node's token ids
    mask_ref,       # (1, 1, SEQ)  int32, this node's attention mask
    slab_ref,       # (SLAB_ROWS, HIDDEN) f32, tables + all H-wide vectors
    w_qkv_ref,      # (NUM_LAYERS*3*NUM_HEADS, HIDDEN, HEAD_DIM) f32
    b_qkv_ref,      # (NUM_LAYERS*3*NUM_HEADS, 1, HEAD_DIM) f32
    w_o_ref,        # (NUM_LAYERS*NUM_HEADS, HEAD_DIM, HIDDEN) f32
    w_ffn1_ref,     # (NUM_LAYERS, HIDDEN, FFN) f32
    b_ffn1_ref,     # (NUM_LAYERS, 1, FFN) f32
    w_ffn2_ref,     # (NUM_LAYERS, FFN, HIDDEN) f32
    cls_ref,        # (HIDDEN+1, CLS_PAD) f32: rows 0..H-1 weight, row H bias
    out_ref,        # (1, 1, CLS_PAD) f32
    qkv_scr,        # VMEM scratch (3, NUM_HEADS, SEQ, HEAD_DIM) f32
):
    f32 = jnp.float32

    def layer_norm(x, g, b):
        mean = jnp.mean(x, axis=-1, keepdims=True)
        cent = x - mean
        var = jnp.mean(cent * cent, axis=-1, keepdims=True)
        return cent * jax.lax.rsqrt(var + LN_EPS) * g + b

    # ---- embeddings: one-hot gather on the MXU + pos/type add + LayerNorm
    ids = ids_ref[0]                                             # (SEQ, 1) int32
    lane_iota = jax.lax.broadcasted_iota(jnp.int32, (SEQ, VOCAB_PAD), 1)
    onehot = (ids == lane_iota).astype(f32)                      # (SEQ, VOCAB_PAD)
    word_emb = slab_ref[R_WORD:R_WORD + VOCAB_PAD, :]            # (VOCAB_PAD, H)
    x = jnp.dot(onehot, word_emb, preferred_element_type=f32)    # (SEQ, H)
    x = x + slab_ref[R_POS:R_POS + SEQ, :]                       # + pos + type
    x = layer_norm(x,
                   slab_ref[R_EMB_G:R_EMB_G + 1, :],
                   slab_ref[R_EMB_B:R_EMB_B + 1, :])

    # additive attention bias over key positions: (1, 1, SEQ)
    bias = (1.0 - mask_ref[...].astype(f32)) * NEG_INF

    # ---- encoder layers (statically unrolled; all weights resident in VMEM)
    for l in range(NUM_LAYERS):
        # per-head QKV projections into head-major scratch (no lane slicing,
        # no concatenates); 1/sqrt(Dh) is already folded into the Q weights
        for kk in range(3):
            for h in range(NUM_HEADS):
                idx = (l * 3 + kk) * NUM_HEADS + h
                qkv_scr[kk, h] = (
                    jnp.dot(x, w_qkv_ref[idx], preferred_element_type=f32)
                    + b_qkv_ref[idx])

        q = qkv_scr[0]                                           # (NH, S, Dh)
        k = qkv_scr[1]
        v = qkv_scr[2]

        # batched attention over heads (contract last dims -> no K transpose)
        s = jnp.einsum('nsd,ntd->nst', q, k,
                       preferred_element_type=f32)               # (NH, S, S)
        s = s + bias
        s = s - jnp.max(s, axis=-1, keepdims=True)
        p = jnp.exp(s)
        p = p * pl.reciprocal(jnp.sum(p, axis=-1, keepdims=True), approx=True)
        ctx = jnp.einsum('nst,ntd->nsd', p, v,
                         preferred_element_type=f32)             # (NH, S, Dh)

        row = R_LAYER0 + l * ROWS_PER_LAYER
        attn = slab_ref[row + 0:row + 1, :]                      # b_o (1, H)
        for h in range(NUM_HEADS):
            attn = attn + jnp.dot(ctx[h], w_o_ref[l * NUM_HEADS + h],
                                  preferred_element_type=f32)    # (S, H)

        h1 = layer_norm(attn + x,
                        slab_ref[row + 1:row + 2, :],            # ln1_g
                        slab_ref[row + 2:row + 3, :])            # ln1_b

        ffn = (jnp.dot(h1, w_ffn1_ref[l], preferred_element_type=f32)
               + b_ffn1_ref[l])
        # TODO(synk): HF BERT uses the exact erf GELU; tanh approximation here.
        ffn = jax.nn.gelu(ffn, approximate=True)
        ffn = (jnp.dot(ffn, w_ffn2_ref[l], preferred_element_type=f32)
               + slab_ref[row + 3:row + 4, :])                   # b_ffn2
        x = layer_norm(ffn + h1,
                       slab_ref[row + 4:row + 5, :],             # ln2_g
                       slab_ref[row + 5:row + 6, :])             # ln2_b

    # sentence representation = outputs[0][:, 0, :]  (model_type != 'bart')
    cls_w = cls_ref[0:HIDDEN, :]                                 # (H, CLS_PAD)
    cls_b = cls_ref[HIDDEN:HIDDEN + 1, :]                        # (1, CLS_PAD)
    logits = jnp.dot(x[0:1, :], cls_w, preferred_element_type=f32) + cls_b
    out_ref[...] = logits.reshape(1, 1, CLS_PAD).astype(out_ref.dtype)


def _const_spec(shape):
    zeros = (0,) * len(shape)
    return pl.BlockSpec(shape, lambda b, zeros=zeros: zeros)


# ----------------------------- parameters -----------------------------------
def init_params(key):
    """Build packed parameter slabs (stand-in for pretrained BERT weights)."""
    std = 0.02
    keys = iter(jax.random.split(key, 12))
    nrm = lambda shape: jax.random.normal(next(keys), shape, jnp.float32) * std

    word_emb = nrm((VOCAB, HIDDEN))
    pos_emb = nrm((MAX_POS, HIDDEN))
    type_emb = nrm((2, HIDDEN))

    # --- slab of HIDDEN-wide rows: tables + every vector parameter
    rows = []
    rows.append(jnp.zeros((VOCAB_PAD, HIDDEN), jnp.float32)
                .at[:VOCAB].set(word_emb))                       # word table
    # TODO(synk): token-type ids hard-coded to segment 0 (KG-BERT uses 0/1).
    rows.append(pos_emb[:SEQ] + type_emb[0][None, :])            # pos + type
    rows.append(jnp.ones((1, HIDDEN), jnp.float32))              # emb ln gamma
    rows.append(jnp.zeros((1, HIDDEN), jnp.float32))             # emb ln beta
    for _ in range(NUM_LAYERS):
        rows.append(jnp.zeros((1, HIDDEN), jnp.float32))         # b_o
        rows.append(jnp.ones((1, HIDDEN), jnp.float32))          # ln1_g
        rows.append(jnp.zeros((1, HIDDEN), jnp.float32))         # ln1_b
        rows.append(jnp.zeros((1, HIDDEN), jnp.float32))         # b_ffn2
        rows.append(jnp.ones((1, HIDDEN), jnp.float32))          # ln2_g
        rows.append(jnp.zeros((1, HIDDEN), jnp.float32))         # ln2_b
    slab_h = jnp.concatenate(rows, axis=0)
    assert slab_h.shape == (SLAB_ROWS, HIDDEN)

    # --- head-major QKV weights; fold 1/sqrt(Dh) softmax scale into Q
    w_qkv = nrm((NUM_LAYERS, 3, NUM_HEADS, HIDDEN, HEAD_DIM))
    b_qkv = jnp.zeros((NUM_LAYERS, 3, NUM_HEADS, 1, HEAD_DIM), jnp.float32)
    scale = 1.0 / float(HEAD_DIM) ** 0.5
    w_qkv = w_qkv.at[:, 0].multiply(scale)
    b_qkv = b_qkv.at[:, 0].multiply(scale)
    w_qkv = w_qkv.reshape(NUM_LAYERS * 3 * NUM_HEADS, HIDDEN, HEAD_DIM)
    b_qkv = b_qkv.reshape(NUM_LAYERS * 3 * NUM_HEADS, 1, HEAD_DIM)

    w_o = nrm((NUM_LAYERS, NUM_HEADS, HEAD_DIM, HIDDEN)).reshape(
        NUM_LAYERS * NUM_HEADS, HEAD_DIM, HIDDEN)
    w_ffn1 = nrm((NUM_LAYERS, HIDDEN, FFN))
    b_ffn1 = jnp.zeros((NUM_LAYERS, 1, FFN), jnp.float32)
    w_ffn2 = nrm((NUM_LAYERS, FFN, HIDDEN))

    # lane-dense classifier head: rows 0..H-1 = weight (N=2 padded to 128),
    # row H = bias
    cls_w = nrm((HIDDEN, NUM_CLASSES))
    cls = (jnp.zeros((HIDDEN + 1, CLS_PAD), jnp.float32)
           .at[:HIDDEN, :NUM_CLASSES].set(cls_w))

    return dict(slab_h=slab_h, w_qkv=w_qkv, b_qkv=b_qkv, w_o=w_o,
                w_ffn1=w_ffn1, b_ffn1=b_ffn1, w_ffn2=w_ffn2, cls=cls)


# ----------------------------- forward --------------------------------------
def kgbert_forward(params, input_ids, attention_mask):
    """
    input_ids:      (num_node, seq) int32
    attention_mask: (num_node, seq) int32 (1 = real token, 0 = pad)
    returns logits: (num_node, 2) float32
    """
    B, S = input_ids.shape
    assert S == SEQ, "kernel is specialized for SEQ"

    # only free reshapes in the wrapper; all embedding/mask math is in-kernel
    ids3 = input_ids.astype(jnp.int32).reshape(B, S, 1)
    mask3 = attention_mask.astype(jnp.int32).reshape(B, 1, S)

    inputs = (ids3, mask3, params["slab_h"], params["w_qkv"], params["b_qkv"],
              params["w_o"], params["w_ffn1"], params["b_ffn1"],
              params["w_ffn2"], params["cls"])

    in_specs = [
        pl.BlockSpec((1, S, 1), lambda b: (b, 0, 0)),     # this node's ids
        pl.BlockSpec((1, 1, S), lambda b: (b, 0, 0)),     # this node's mask
    ] + [_const_spec(a.shape) for a in inputs[2:]]        # weights, fetched once

    logits_pad = pl.pallas_call(
        _fused_forward_kernel,
        out_shape=jax.ShapeDtypeStruct((B, 1, CLS_PAD), jnp.float32),
        grid=(B,),
        in_specs=in_specs,
        out_specs=pl.BlockSpec((1, 1, CLS_PAD), lambda b: (b, 0, 0)),
        scratch_shapes=[pltpu.VMEM((3, NUM_HEADS, SEQ, HEAD_DIM), jnp.float32)],
        compiler_params=pltpu.CompilerParams(
            dimension_semantics=("parallel",)),           # v7x: split batch over TCs
    )(*inputs)

    # self.dropout has p=0 -> identity in forward
    # TODO(synk): nn.Dropout with p>0 (training-mode masking) not implemented.
    return logits_pad[:, 0, :NUM_CLASSES]


# ----------------------------- main ------------------------------------------
if __name__ == "__main__":
    key = jax.random.PRNGKey(0)
    k_param, k_ids = jax.random.split(key)

    params = init_params(k_param)

    num_node, seq = 2, SEQ
    input_ids = jax.random.randint(k_ids, (num_node, seq), 0, VOCAB, jnp.int32)
    attention_mask = jnp.array([[1, 1, 1, 1, 1, 1, 0, 0],
                                [1, 1, 1, 1, 1, 1, 1, 1]], dtype=jnp.int32)

    logits = jax.jit(kgbert_forward)(params, input_ids, attention_mask)
    logits = jax.block_until_ready(logits)

    assert logits.shape == (num_node, NUM_CLASSES)
    assert bool(jnp.all(jnp.isfinite(logits)))
    print("KERNEL_OK")
</pallas_src>

<mosaic_0001>
module attributes {stable_mosaic.version = 11 : i64} {
  func.func @_fused_forward_kernel(%arg0: i32, %arg1: memref<1x8x1xi32, #tpu.memory_space<vmem>>, %arg2: memref<1x1x8xi32, #tpu.memory_space<vmem>>, %arg3: memref<150x32xf32, #tpu.memory_space<vmem>>, %arg4: memref<12x32x16xf32, #tpu.memory_space<vmem>>, %arg5: memref<12x1x16xf32, #tpu.memory_space<vmem>>, %arg6: memref<4x16x32xf32, #tpu.memory_space<vmem>>, %arg7: memref<2x32x64xf32, #tpu.memory_space<vmem>>, %arg8: memref<2x1x64xf32, #tpu.memory_space<vmem>>, %arg9: memref<2x64x32xf32, #tpu.memory_space<vmem>>, %arg10: memref<33x128xf32, #tpu.memory_space<vmem>>, %arg11: memref<1x1x128xf32, #tpu.memory_space<vmem>>, %arg12: memref<3x2x8x16xf32, #tpu.memory_space<vmem>>) attributes {dimension_semantics = [#tpu.dimension_semantics<parallel>], iteration_bounds = array<i64: 2>, scalar_prefetch = 0 : i64, scratch_operands = 1 : i64, tpu.core_type = #tpu.core_type<tc>, window_params = [{transform_indices = @transform_0, window_bounds = array<i64: 1, 8, 1>}, {transform_indices = @transform_1, window_bounds = array<i64: 1, 1, 8>}, {pipeline_mode = #tpu.pipeline_mode<synchronous>, transform_indices = @transform_2, window_bounds = array<i64: 150, 32>}, {pipeline_mode = #tpu.pipeline_mode<synchronous>, transform_indices = @transform_3, window_bounds = array<i64: 12, 32, 16>}, {pipeline_mode = #tpu.pipeline_mode<synchronous>, transform_indices = @transform_4, window_bounds = array<i64: 12, 1, 16>}, {pipeline_mode = #tpu.pipeline_mode<synchronous>, transform_indices = @transform_5, window_bounds = array<i64: 4, 16, 32>}, {pipeline_mode = #tpu.pipeline_mode<synchronous>, transform_indices = @transform_6, window_bounds = array<i64: 2, 32, 64>}, {pipeline_mode = #tpu.pipeline_mode<synchronous>, transform_indices = @transform_7, window_bounds = array<i64: 2, 1, 64>}, {pipeline_mode = #tpu.pipeline_mode<synchronous>, transform_indices = @transform_8, window_bounds = array<i64: 2, 64, 32>}, {pipeline_mode = #tpu.pipeline_mode<synchronous>, transform_indices = @transform_9, window_bounds = array<i64: 33, 128>}, {transform_indices = @transform_10, window_bounds = array<i64: 1, 1, 128>}]} {
    %c0 = arith.constant 0 : index
    %c0_0 = arith.constant 0 : index
    %c0_1 = arith.constant 0 : index
    %0 = vector.load %arg1[%c0, %c0_0, %c0_1] : memref<1x8x1xi32, #tpu.memory_space<vmem>>, vector<1x8x1xi32>
    %1 = vector.shape_cast %0 : vector<1x8x1xi32> to vector<8x1xi32>
    %2 = tpu.iota {dimensions = array<i32: 1>} : vector<8x128xi32>
    %3 = vector.broadcast %1 : vector<8x1xi32> to vector<8x128xi32>
    %4 = arith.cmpi eq, %3, %2 : vector<8x128xi32>
    %5 = arith.extui %4 : vector<8x128xi1> to vector<8x128xi32>
    %6 = arith.sitofp %5 : vector<8x128xi32> to vector<8x128xf32>
    %c0_2 = arith.constant 0 : index
    %c0_3 = arith.constant 0 : index
    %7 = vector.load %arg3[%c0_2, %c0_3] : memref<150x32xf32, #tpu.memory_space<vmem>>, vector<128x32xf32>
    %cst = arith.constant dense<0.000000e+00> : vector<8x32xf32>
    %8 = tpu.matmul %6, %7, %cst {dimension_numbers = #tpu.dot_dimension_numbers<[1], [0], [0], [1], [0, 0, 1, 1], [], []>} : vector<8x128xf32>, vector<128x32xf32>, vector<8x32xf32> -> vector<8x32xf32>
    %c128 = arith.constant 128 : index
    %c0_4 = arith.constant 0 : index
    %9 = vector.load %arg3[%c128, %c0_4] : memref<150x32xf32, #tpu.memory_space<vmem>>, vector<8x32xf32>
    %10 = arith.addf %8, %9 : vector<8x32xf32>
    %c136 = arith.constant 136 : index
    %c0_5 = arith.constant 0 : index
    %11 = vector.load %arg3[%c136, %c0_5] : memref<150x32xf32, #tpu.memory_space<vmem>>, vector<1x32xf32>
    %c137 = arith.constant 137 : index
    %c0_6 = arith.constant 0 : index
    %12 = vector.load %arg3[%c137, %c0_6] : memref<150x32xf32, #tpu.memory_space<vmem>>, vector<1x32xf32>
    %cst_7 = arith.constant dense<0.000000e+00> : vector<8xf32>
    %13 = vector.multi_reduction <add>, %10, %cst_7 [1] : vector<8x32xf32> to vector<8xf32>
    %14 = vector.shape_cast %13 : vector<8xf32> to vector<8x1xf32>
    %cst_8 = arith.constant 3.200000e+01 : f32
    %15 = vector.broadcast %cst_8 : f32 to vector<8x1xf32>
    %16 = arith.divf %14, %15 : vector<8x1xf32>
    %17 = vector.broadcast %16 : vector<8x1xf32> to vector<8x32xf32>
    %18 = arith.subf %10, %17 : vector<8x32xf32>
    %19 = arith.mulf %18, %18 : vector<8x32xf32>
    %cst_9 = arith.constant dense<0.000000e+00> : vector<8xf32>
    %20 = vector.multi_reduction <add>, %19, %cst_9 [1] : vector<8x32xf32> to vector<8xf32>
    %21 = vector.shape_cast %20 : vector<8xf32> to vector<8x1xf32>
    %cst_10 = arith.constant 3.200000e+01 : f32
    %22 = vector.broadcast %cst_10 : f32 to vector<8x1xf32>
    %23 = arith.divf %21, %22 : vector<8x1xf32>
    %cst_11 = arith.constant 9.99999996E-13 : f32
    %24 = vector.broadcast %cst_11 : f32 to vector<8x1xf32>
    %25 = arith.addf %23, %24 : vector<8x1xf32>
    %26 = math.rsqrt %25 : vector<8x1xf32>
    %27 = vector.broadcast %26 : vector<8x1xf32> to vector<8x32xf32>
    %28 = arith.mulf %18, %27 : vector<8x32xf32>
    %29 = vector.broadcast %11 : vector<1x32xf32> to vector<8x32xf32>
    %30 = arith.mulf %28, %29 : vector<8x32xf32>
    %31 = vector.broadcast %12 : vector<1x32xf32> to vector<8x32xf32>
    %32 = arith.addf %30, %31 : vector<8x32xf32>
    %c0_12 = arith.constant 0 : index
    %c0_13 = arith.constant 0 : index
    %c0_14 = arith.constant 0 : index
    %33 = vector.load %arg2[%c0_12, %c0_13, %c0_14] : memref<1x1x8xi32, #tpu.memory_space<vmem>>, vector<1x1x8xi32>
    %34 = arith.sitofp %33 : vector<1x1x8xi32> to vector<1x1x8xf32>
    %cst_15 = arith.constant 1.000000e+00 : f32
    %35 = vector.broadcast %cst_15 : f32 to vector<1x1x8xf32>
    %36 = arith.subf %35, %34 : vector<1x1x8xf32>
    %cst_16 = arith.constant -1.000000e+09 : f32
    %37 = vector.broadcast %cst_16 : f32 to vector<1x1x8xf32>
    %38 = arith.mulf %36, %37 : vector<1x1x8xf32>
    %c0_17 = arith.constant 0 : index
    %c0_18 = arith.constant 0 : index
    %c0_19 = arith.constant 0 : index
    %39 = vector.load %arg4[%c0_17, %c0_18, %c0_19] : memref<12x32x16xf32, #tpu.memory_space<vmem>>, vector<1x32x16xf32>
    %40 = vector.shape_cast %39 : vector<1x32x16xf32> to vector<32x16xf32>
    %cst_20 = arith.constant dense<0.000000e+00> : vector<8x16xf32>
    %41 = tpu.matmul %32, %40, %cst_20 {dimension_numbers = #tpu.dot_dimension_numbers<[1], [0], [0], [1], [0, 0, 1, 1], [], []>} : vector<8x32xf32>, vector<32x16xf32>, vector<8x16xf32> -> vector<8x16xf32>
    %c0_21 = arith.constant 0 : index
    %c0_22 = arith.constant 0 : index
    %c0_23 = arith.constant 0 : index
    %42 = vector.load %arg5[%c0_21, %c0_22, %c0_23] : memref<12x1x16xf32, #tpu.memory_space<vmem>>, vector<1x1x16xf32>
    %43 = vector.shape_cast %42 : vector<1x1x16xf32> to vector<1x16xf32>
    %44 = vector.broadcast %43 : vector<1x16xf32> to vector<8x16xf32>
    %45 = arith.addf %41, %44 : vector<8x16xf32>
    %c0_24 = arith.constant 0 : index
    %c0_25 = arith.constant 0 : index
    %c0_26 = arith.constant 0 : index
    %c0_27 = arith.constant 0 : index
    %46 = vector.load %arg12[%c0_24, %c0_25, %c0_26, %c0_27] : memref<3x2x8x16xf32, #tpu.memory_space<vmem>>, vector<1x1x8x16xf32>
    %47 = vector.shape_cast %46 : vector<1x1x8x16xf32> to vector<8x16xf32>
    %48 = vector.shape_cast %45 : vector<8x16xf32> to vector<1x1x8x16xf32>
    tpu.vector_store %arg12[%c0_24, %c0_25, %c0_26, %c0_27], %48 {strides = array<i32>} : memref<3x2x8x16xf32, #tpu.memory_space<vmem>>, vector<1x1x8x16xf32>,
    %c1 = arith.constant 1 : index
    %c0_28 = arith.constant 0 : index
    %c0_29 = arith.constant 0 : index
    %49 = vector.load %arg4[%c1, %c0_28, %c0_29] : memref<12x32x16xf32, #tpu.memory_space<vmem>>, vector<1x32x16xf32>
    %50 = vector.shape_cast %49 : vector<1x32x16xf32> to vector<32x16xf32>
    %cst_30 = arith.constant dense<0.000000e+00> : vector<8x16xf32>
    %51 = tpu.matmul %32, %50, %cst_30 {dimension_numbers = #tpu.dot_dimension_numbers<[1], [0], [0], [1], [0, 0, 1, 1], [], []>} : vector<8x32xf32>, vector<32x16xf32>, vector<8x16xf32> -> vector<8x16xf32>
    %c1_31 = arith.constant 1 : index
    %c0_32 = arith.constant 0 : index
    %c0_33 = arith.constant 0 : index
    %52 = vector.load %arg5[%c1_31, %c0_32, %c0_33] : memref<12x1x16xf32, #tpu.memory_space<vmem>>, vector<1x1x16xf32>
    %53 = vector.shape_cast %52 : vector<1x1x16xf32> to vector<1x16xf32>
    %54 = vector.broadcast %53 : vector<1x16xf32> to vector<8x16xf32>
    %55 = arith.addf %51, %54 : vector<8x16xf32>
    %c0_34 = arith.constant 0 : index
    %c1_35 = arith.constant 1 : index
    %c0_36 = arith.constant 0 : index
    %c0_37 = arith.constant 0 : index
    %56 = vector.load %arg12[%c0_34, %c1_35, %c0_36, %c0_37] : memref<3x2x8x16xf32, #tpu.memory_space<vmem>>, vector<1x1x8x16xf32>
    %57 = vector.shape_cast %56 : vector<1x1x8x16xf32> to vector<8x16xf32>
    %58 = vector.shape_cast %55 : vector<8x16xf32> to vector<1x1x8x16xf32>
    tpu.vector_store %arg12[%c0_34, %c1_35, %c0_36, %c0_37], %58 {strides = array<i32>} : memref<3x2x8x16xf32, #tpu.memory_space<vmem>>, vector<1x1x8x16xf32>,
    %c2 = arith.constant 2 : index
    %c0_38 = arith.constant 0 : index
    %c0_39 = arith.constant 0 : index
    %59 = vector.load %arg4[%c2, %c0_38, %c0_39] : memref<12x32x16xf32, #tpu.memory_space<vmem>>, vector<1x32x16xf32>
    %60 = vector.shape_cast %59 : vector<1x32x16xf32> to vector<32x16xf32>
    %cst_40 = arith.constant dense<0.000000e+00> : vector<8x16xf32>
    %61 = tpu.matmul %32, %60, %cst_40 {dimension_numbers = #tpu.dot_dimension_numbers<[1], [0], [0], [1], [0, 0, 1, 1], [], []>} : vector<8x32xf32>, vector<32x16xf32>, vector<8x16xf32> -> vector<8x16xf32>
    %c2_41 = arith.constant 2 : index
    %c0_42 = arith.constant 0 : index
    %c0_43 = arith.constant 0 : index
    %62 = vector.load %arg5[%c2_41, %c0_42, %c0_43] : memref<12x1x16xf32, #tpu.memory_space<vmem>>, vector<1x1x16xf32>
    %63 = vector.shape_cast %62 : vector<1x1x16xf32> to vector<1x16xf32>
    %64 = vector.broadcast %63 : vector<1x16xf32> to vector<8x16xf32>
    %65 = arith.addf %61, %64 : vector<8x16xf32>
    %c1_44 = arith.constant 1 : index
    %c0_45 = arith.constant 0 : index
    %c0_46 = arith.constant 0 : index
    %c0_47 = arith.constant 0 : index
    %66 = vector.load %arg12[%c1_44, %c0_45, %c0_46, %c0_47] : memref<3x2x8x16xf32, #tpu.memory_space<vmem>>, vector<1x1x8x16xf32>
    %67 = vector.shape_cast %66 : vector<1x1x8x16xf32> to vector<8x16xf32>
    %68 = vector.shape_cast %65 : vector<8x16xf32> to vector<1x1x8x16xf32>
    tpu.vector_store %arg12[%c1_44, %c0_45, %c0_46, %c0_47], %68 {strides = array<i32>} : memref<3x2x8x16xf32, #tpu.memory_space<vmem>>, vector<1x1x8x16xf32>,
    %c3 = arith.constant 3 : index
    %c0_48 = arith.constant 0 : index
    %c0_49 = arith.constant 0 : index
    %69 = vector.load %arg4[%c3, %c0_48, %c0_49] : memref<12x32x16xf32, #tpu.memory_space<vmem>>, vector<1x32x16xf32>
    %70 = vector.shape_cast %69 : vector<1x32x16xf32> to vector<32x16xf32>
    %cst_50 = arith.constant dense<0.000000e+00> : vector<8x16xf32>
    %71 = tpu.matmul %32, %70, %cst_50 {dimension_numbers = #tpu.dot_dimension_numbers<[1], [0], [0], [1], [0, 0, 1, 1], [], []>} : vector<8x32xf32>, vector<32x16xf32>, vector<8x16xf32> -> vector<8x16xf32>
    %c3_51 = arith.constant 3 : index
    %c0_52 = arith.constant 0 : index
    %c0_53 = arith.constant 0 : index
    %72 = vector.load %arg5[%c3_51, %c0_52, %c0_53] : memref<12x1x16xf32, #tpu.memory_space<vmem>>, vector<1x1x16xf32>
    %73 = vector.shape_cast %72 : vector<1x1x16xf32> to vector<1x16xf32>
    %74 = vector.broadcast %73 : vector<1x16xf32> to vector<8x16xf32>
    %75 = arith.addf %71, %74 : vector<8x16xf32>
    %c1_54 = arith.constant 1 : index
    %c1_55 = arith.constant 1 : index
    %c0_56 = arith.constant 0 : index
    %c0_57 = arith.constant 0 : index
    %76 = vector.load %arg12[%c1_54, %c1_55, %c0_56, %c0_57] : memref<3x2x8x16xf32, #tpu.memory_space<vmem>>, vector<1x1x8x16xf32>
    %77 = vector.shape_cast %76 : vector<1x1x8x16xf32> to vector<8x16xf32>
    %78 = vector.shape_cast %75 : vector<8x16xf32> to vector<1x1x8x16xf32>
    tpu.vector_store %arg12[%c1_54, %c1_55, %c0_56, %c0_57], %78 {strides = array<i32>} : memref<3x2x8x16xf32, #tpu.memory_space<vmem>>, vector<1x1x8x16xf32>,
    %c4 = arith.constant 4 : index
    %c0_58 = arith.constant 0 : index
    %c0_59 = arith.constant 0 : index
    %79 = vector.load %arg4[%c4, %c0_58, %c0_59] : memref<12x32x16xf32, #tpu.memory_space<vmem>>, vector<1x32x16xf32>
    %80 = vector.shape_cast %79 : vector<1x32x16xf32> to vector<32x16xf32>
    %cst_60 = arith.constant dense<0.000000e+00> : vector<8x16xf32>
    %81 = tpu.matmul %32, %80, %cst_60 {dimension_numbers = #tpu.dot_dimension_numbers<[1], [0], [0], [1], [0, 0, 1, 1], [], []>} : vector<8x32xf32>, vector<32x16xf32>, vector<8x16xf32> -> vector<8x16xf32>
    %c4_61 = arith.constant 4 : index
    %c0_62 = arith.constant 0 : index
    %c0_63 = arith.constant 0 : index
    %82 = vector.load %arg5[%c4_61, %c0_62, %c0_63] : memref<12x1x16xf32, #tpu.memory_space<vmem>>, vector<1x1x16xf32>
    %83 = vector.shape_cast %82 : vector<1x1x16xf32> to vector<1x16xf32>
    %84 = vector.broadcast %83 : vector<1x16xf32> to vector<8x16xf32>
    %85 = arith.addf %81, %84 : vector<8x16xf32>
    %c2_64 = arith.constant 2 : index
    %c0_65 = arith.constant 0 : index
    %c0_66 = arith.constant 0 : index
    %c0_67 = arith.constant 0 : index
    %86 = vector.load %arg12[%c2_64, %c0_65, %c0_66, %c0_67] : memref<3x2x8x16xf32, #tpu.memory_space<vmem>>, vector<1x1x8x16xf32>
    %87 = vector.shape_cast %86 : vector<1x1x8x16xf32> to vector<8x16xf32>
    %88 = vector.shape_cast %85 : vector<8x16xf32> to vector<1x1x8x16xf32>
    tpu.vector_store %arg12[%c2_64, %c0_65, %c0_66, %c0_67], %88 {strides = array<i32>} : memref<3x2x8x16xf32, #tpu.memory_space<vmem>>, vector<1x1x8x16xf32>,
    %c5 = arith.constant 5 : index
    %c0_68 = arith.constant 0 : index
    %c0_69 = arith.constant 0 : index
    %89 = vector.load %arg4[%c5, %c0_68, %c0_69] : memref<12x32x16xf32, #tpu.memory_space<vmem>>, vector<1x32x16xf32>
    %90 = vector.shape_cast %89 : vector<1x32x16xf32> to vector<32x16xf32>
    %cst_70 = arith.constant dense<0.000000e+00> : vector<8x16xf32>
    %91 = tpu.matmul %32, %90, %cst_70 {dimension_numbers = #tpu.dot_dimension_numbers<[1], [0], [0], [1], [0, 0, 1, 1], [], []>} : vector<8x32xf32>, vector<32x16xf32>, vector<8x16xf32> -> vector<8x16xf32>
    %c5_71 = arith.constant 5 : index
    %c0_72 = arith.constant 0 : index
    %c0_73 = arith.constant 0 : index
    %92 = vector.load %arg5[%c5_71, %c0_72, %c0_73] : memref<12x1x16xf32, #tpu.memory_space<vmem>>, vector<1x1x16xf32>
    %93 = vector.shape_cast %92 : vector<1x1x16xf32> to vector<1x16xf32>
    %94 = vector.broadcast %93 : vector<1x16xf32> to vector<8x16xf32>
    %95 = arith.addf %91, %94 : vector<8x16xf32>
    %c2_74 = arith.constant 2 : index
    %c1_75 = arith.constant 1 : index
    %c0_76 = arith.constant 0 : index
    %c0_77 = arith.constant 0 : index
    %96 = vector.load %arg12[%c2_74, %c1_75, %c0_76, %c0_77] : memref<3x2x8x16xf32, #tpu.memory_space<vmem>>, vector<1x1x8x16xf32>
    %97 = vector.shape_cast %96 : vector<1x1x8x16xf32> to vector<8x16xf32>
    %98 = vector.shape_cast %95 : vector<8x16xf32> to vector<1x1x8x16xf32>
    tpu.vector_store %arg12[%c2_74, %c1_75, %c0_76, %c0_77], %98 {strides = array<i32>} : memref<3x2x8x16xf32, #tpu.memory_space<vmem>>, vector<1x1x8x16xf32>,
    %c0_78 = arith.constant 0 : index
    %c0_79 = arith.constant 0 : index
    %c0_80 = arith.constant 0 : index
    %c0_81 = arith.constant 0 : index
    %99 = vector.load %arg12[%c0_78, %c0_79, %c0_80, %c0_81] : memref<3x2x8x16xf32, #tpu.memory_space<vmem>>, vector<1x2x8x16xf32>
    %100 = vector.shape_cast %99 : vector<1x2x8x16xf32> to vector<2x8x16xf32>
    %c1_82 = arith.constant 1 : index
    %c0_83 = arith.constant 0 : index
    %c0_84 = arith.constant 0 : index
    %c0_85 = arith.constant 0 : index
    %101 = vector.load %arg12[%c1_82, %c0_83, %c0_84, %c0_85] : memref<3x2x8x16xf32, #tpu.memory_space<vmem>>, vector<1x2x8x16xf32>
    %102 = vector.shape_cast %101 : vector<1x2x8x16xf32> to vector<2x8x16xf32>
    %c2_86 = arith.constant 2 : index
    %c0_87 = arith.constant 0 : index
    %c0_88 = arith.constant 0 : index
    %c0_89 = arith.constant 0 : index
    %103 = vector.load %arg12[%c2_86, %c0_87, %c0_88, %c0_89] : memref<3x2x8x16xf32, #tpu.memory_space<vmem>>, vector<1x2x8x16xf32>
    %104 = vector.shape_cast %103 : vector<1x2x8x16xf32> to vector<2x8x16xf32>
    "tpu.trace_start"() <{level = 10 : i32, message = "nsd,ntd->nst"}> : () -> ()
    %cst_90 = arith.constant dense<0.000000e+00> : vector<2x8x8xf32>
    %105 = tpu.matmul %100, %102, %cst_90 {dimension_numbers = #tpu.dot_dimension_numbers<[2], [2], [1], [1], [0, 0, 0, 1, 1, 1], [0], [0]>} : vector<2x8x16xf32>, vector<2x8x16xf32>, vector<2x8x8xf32> -> vector<2x8x8xf32>
    "tpu.trace_stop"() : () -> ()
    %106 = vector.broadcast %38 : vector<1x1x8xf32> to vector<2x8x8xf32>
    %107 = arith.addf %105, %106 : vector<2x8x8xf32>
    %cst_91 = arith.constant dense<0xFF800000> : vector<2x8xf32>
    %108 = vector.multi_reduction <maximumf>, %107, %cst_91 [2] : vector<2x8x8xf32> to vector<2x8xf32>
    %109 = vector.shape_cast %108 : vector<2x8xf32> to vector<2x8x1xf32>
    %110 = vector.broadcast %109 : vector<2x8x1xf32> to vector<2x8x8xf32>
    %111 = arith.subf %107, %110 : vector<2x8x8xf32>
    %112 = math.exp %111 : vector<2x8x8xf32>
    %cst_92 = arith.constant dense<0.000000e+00> : vector<2x8xf32>
    %113 = vector.multi_reduction <add>, %112, %cst_92 [2] : vector<2x8x8xf32> to vector<2x8xf32>
    %114 = vector.shape_cast %113 : vector<2x8xf32> to vector<2x8x1xf32>
    %115 = tpu.reciprocal %114 {approx = true} : vector<2x8x1xf32> -> vector<2x8x1xf32>
    %116 = vector.broadcast %115 : vector<2x8x1xf32> to vector<2x8x8xf32>
    %117 = arith.mulf %112, %116 : vector<2x8x8xf32>
    "tpu.trace_start"() <{level = 10 : i32, message = "nst,ntd->nsd"}> : () -> ()
    %cst_93 = arith.constant dense<0.000000e+00> : vector<2x8x16xf32>
    %118 = tpu.matmul %117, %104, %cst_93 {dimension_numbers = #tpu.dot_dimension_numbers<[2], [1], [1], [2], [0, 0, 0, 1, 1, 2], [0], [0]>} : vector<2x8x8xf32>, vector<2x8x16xf32>, vector<2x8x16xf32> -> vector<2x8x16xf32>
    "tpu.trace_stop"() : () -> ()
    %c138 = arith.constant 138 : index
    %c0_94 = arith.constant 0 : index
    %119 = vector.load %arg3[%c138, %c0_94] : memref<150x32xf32, #tpu.memory_space<vmem>>, vector<1x32xf32>
    %120 = vector.extract_strided_slice %118 {offsets = [0, 0, 0], sizes = [1, 8, 16], strides = [1, 1, 1]} : vector<2x8x16xf32> to vector<1x8x16xf32>
    %121 = vector.shape_cast %120 : vector<1x8x16xf32> to vector<8x16xf32>
    %c0_95 = arith.constant 0 : index
    %c0_96 = arith.constant 0 : index
    %c0_97 = arith.constant 0 : index
    %122 = vector.load %arg6[%c0_95, %c0_96, %c0_97] : memref<4x16x32xf32, #tpu.memory_space<vmem>>, vector<1x16x32xf32>
    %123 = vector.shape_cast %122 : vector<1x16x32xf32> to vector<16x32xf32>
    %cst_98 = arith.constant dense<0.000000e+00> : vector<8x32xf32>
    %124 = tpu.matmul %121, %123, %cst_98 {dimension_numbers = #tpu.dot_dimension_numbers<[1], [0], [0], [1], [0, 0, 1, 1], [], []>} : vector<8x16xf32>, vector<16x32xf32>, vector<8x32xf32> -> vector<8x32xf32>
    %125 = vector.broadcast %119 : vector<1x32xf32> to vector<8x32xf32>
    %126 = arith.addf %125, %124 : vector<8x32xf32>
    %127 = vector.extract_strided_slice %118 {offsets = [1, 0, 0], sizes = [1, 8, 16], strides = [1, 1, 1]} : vector<2x8x16xf32> to vector<1x8x16xf32>
    %128 = vector.shape_cast %127 : vector<1x8x16xf32> to vector<8x16xf32>
    %c1_99 = arith.constant 1 : index
    %c0_100 = arith.constant 0 : index
    %c0_101 = arith.constant 0 : index
    %129 = vector.load %arg6[%c1_99, %c0_100, %c0_101] : memref<4x16x32xf32, #tpu.memory_space<vmem>>, vector<1x16x32xf32>
    %130 = vector.shape_cast %129 : vector<1x16x32xf32> to vector<16x32xf32>
    %cst_102 = arith.constant dense<0.000000e+00> : vector<8x32xf32>
    %131 = tpu.matmul %128, %130, %cst_102 {dimension_numbers = #tpu.dot_dimension_numbers<[1], [0], [0], [1], [0, 0, 1, 1], [], []>} : vector<8x16xf32>, vector<16x32xf32>, vector<8x32xf32> -> vector<8x32xf32>
    %132 = arith.addf %126, %131 : vector<8x32xf32>
    %133 = arith.addf %132, %32 : vector<8x32xf32>
    %c139 = arith.constant 139 : index
    %c0_103 = arith.constant 0 : index
    %134 = vector.load %arg3[%c139, %c0_103] : memref<150x32xf32, #tpu.memory_space<vmem>>, vector<1x32xf32>
    %c140 = arith.constant 140 : index
    %c0_104 = arith.constant 0 : index
    %135 = vector.load %arg3[%c140, %c0_104] : memref<150x32xf32, #tpu.memory_space<vmem>>, vector<1x32xf32>
    %cst_105 = arith.constant dense<0.000000e+00> : vector<8xf32>
    %136 = vector.multi_reduction <add>, %133, %cst_105 [1] : vector<8x32xf32> to vector<8xf32>
    %137 = vector.shape_cast %136 : vector<8xf32> to vector<8x1xf32>
    %cst_106 = arith.constant 3.200000e+01 : f32
    %138 = vector.broadcast %cst_106 : f32 to vector<8x1xf32>
    %139 = arith.divf %137, %138 : vector<8x1xf32>
    %140 = vector.broadcast %139 : vector<8x1xf32> to vector<8x32xf32>
    %141 = arith.subf %133, %140 : vector<8x32xf32>
    %142 = arith.mulf %141, %141 : vector<8x32xf32>
    %cst_107 = arith.constant dense<0.000000e+00> : vector<8xf32>
    %143 = vector.multi_reduction <add>, %142, %cst_107 [1] : vector<8x32xf32> to vector<8xf32>
    %144 = vector.shape_cast %143 : vector<8xf32> to vector<8x1xf32>
    %cst_108 = arith.constant 3.200000e+01 : f32
    %145 = vector.broadcast %cst_108 : f32 to vector<8x1xf32>
    %146 = arith.divf %144, %145 : vector<8x1xf32>
    %cst_109 = arith.constant 9.99999996E-13 : f32
    %147 = vector.broadcast %cst_109 : f32 to vector<8x1xf32>
    %148 = arith.addf %146, %147 : vector<8x1xf32>
    %149 = math.rsqrt %148 : vector<8x1xf32>
    %150 = vector.broadcast %149 : vector<8x1xf32> to vector<8x32xf32>
    %151 = arith.mulf %141, %150 : vector<8x32xf32>
    %152 = vector.broadcast %134 : vector<1x32xf32> to vector<8x32xf32>
    %153 = arith.mulf %151, %152 : vector<8x32xf32>
    %154 = vector.broadcast %135 : vector<1x32xf32> to vector<8x32xf32>
    %155 = arith.addf %153, %154 : vector<8x32xf32>
    %c0_110 = arith.constant 0 : index
    %c0_111 = arith.constant 0 : index
    %c0_112 = arith.constant 0 : index
    %156 = vector.load %arg7[%c0_110, %c0_111, %c0_112] : memref<2x32x64xf32, #tpu.memory_space<vmem>>, vector<1x32x64xf32>
    %157 = vector.shape_cast %156 : vector<1x32x64xf32> to vector<32x64xf32>
    %cst_113 = arith.constant dense<0.000000e+00> : vector<8x64xf32>
    %158 = tpu.matmul %155, %157, %cst_113 {dimension_numbers = #tpu.dot_dimension_numbers<[1], [0], [0], [1], [0, 0, 1, 1], [], []>} : vector<8x32xf32>, vector<32x64xf32>, vector<8x64xf32> -> vector<8x64xf32>
    %c0_114 = arith.constant 0 : index
    %c0_115 = arith.constant 0 : index
    %c0_116 = arith.constant 0 : index
    %159 = vector.load %arg8[%c0_114, %c0_115, %c0_116] : memref<2x1x64xf32, #tpu.memory_space<vmem>>, vector<1x1x64xf32>
    %160 = vector.shape_cast %159 : vector<1x1x64xf32> to vector<1x64xf32>
    %161 = vector.broadcast %160 : vector<1x64xf32> to vector<8x64xf32>
    %162 = arith.addf %158, %161 : vector<8x64xf32>
    %163 = arith.mulf %162, %162 : vector<8x64xf32>
    %164 = arith.mulf %162, %163 : vector<8x64xf32>
    %cst_117 = arith.constant 4.471500e-02 : f32
    %165 = vector.broadcast %cst_117 : f32 to vector<8x64xf32>
    %166 = arith.mulf %165, %164 : vector<8x64xf32>
    %167 = arith.addf %162, %166 : vector<8x64xf32>
    %cst_118 = arith.constant 0.797884583 : f32
    %168 = vector.broadcast %cst_118 : f32 to vector<8x64xf32>
    %169 = arith.mulf %168, %167 : vector<8x64xf32>
    %170 = math.tanh %169 : vector<8x64xf32>
    %cst_119 = arith.constant 1.000000e+00 : f32
    %171 = vector.broadcast %cst_119 : f32 to vector<8x64xf32>
    %172 = arith.addf %171, %170 : vector<8x64xf32>
    %cst_120 = arith.constant 5.000000e-01 : f32
    %173 = vector.broadcast %cst_120 : f32 to vector<8x64xf32>
    %174 = arith.mulf %173, %172 : vector<8x64xf32>
    %175 = arith.mulf %162, %174 : vector<8x64xf32>
    %c0_121 = arith.constant 0 : index
    %c0_122 = arith.constant 0 : index
    %c0_123 = arith.constant 0 : index
    %176 = vector.load %arg9[%c0_121, %c0_122, %c0_123] : memref<2x64x32xf32, #tpu.memory_space<vmem>>, vector<1x64x32xf32>
    %177 = vector.shape_cast %176 : vector<1x64x32xf32> to vector<64x32xf32>
    %cst_124 = arith.constant dense<0.000000e+00> : vector<8x32xf32>
    %178 = tpu.matmul %175, %177, %cst_124 {dimension_numbers = #tpu.dot_dimension_numbers<[1], [0], [0], [1], [0, 0, 1, 1], [], []>} : vector<8x64xf32>, vector<64x32xf32>, vector<8x32xf32> -> vector<8x32xf32>
    %c141 = arith.constant 141 : index
    %c0_125 = arith.constant 0 : index
    %179 = vector.load %arg3[%c141, %c0_125] : memref<150x32xf32, #tpu.memory_space<vmem>>, vector<1x32xf32>
    %180 = vector.broadcast %179 : vector<1x32xf32> to vector<8x32xf32>
    %181 = arith.addf %178, %180 : vector<8x32xf32>
    %182 = arith.addf %181, %155 : vector<8x32xf32>
    %c142 = arith.constant 142 : index
    %c0_126 = arith.constant 0 : index
    %183 = vector.load %arg3[%c142, %c0_126] : memref<150x32xf32, #tpu.memory_space<vmem>>, vector<1x32xf32>
    %c143 = arith.constant 143 : index
    %c0_127 = arith.constant 0 : index
    %184 = vector.load %arg3[%c143, %c0_127] : memref<150x32xf32, #tpu.memory_space<vmem>>, vector<1x32xf32>
    %cst_128 = arith.constant dense<0.000000e+00> : vector<8xf32>
    %185 = vector.multi_reduction <add>, %182, %cst_128 [1] : vector<8x32xf32> to vector<8xf32>
    %186 = vector.shape_cast %185 : vector<8xf32> to vector<8x1xf32>
    %cst_129 = arith.constant 3.200000e+01 : f32
    %187 = vector.broadcast %cst_129 : f32 to vector<8x1xf32>
    %188 = arith.divf %186, %187 : vector<8x1xf32>
    %189 = vector.broadcast %188 : vector<8x1xf32> to vector<8x32xf32>
    %190 = arith.subf %182, %189 : vector<8x32xf32>
    %191 = arith.mulf %190, %190 : vector<8x32xf32>
    %cst_130 = arith.constant dense<0.000000e+00> : vector<8xf32>
    %192 = vector.multi_reduction <add>, %191, %cst_130 [1] : vector<8x32xf32> to vector<8xf32>
    %193 = vector.shape_cast %192 : vector<8xf32> to vector<8x1xf32>
    %cst_131 = arith.constant 3.200000e+01 : f32
    %194 = vector.broadcast %cst_131 : f32 to vector<8x1xf32>
    %195 = arith.divf %193, %194 : vector<8x1xf32>
    %cst_132 = arith.constant 9.99999996E-13 : f32
    %196 = vector.broadcast %cst_132 : f32 to vector<8x1xf32>
    %197 = arith.addf %195, %196 : vector<8x1xf32>
    %198 = math.rsqrt %197 : vector<8x1xf32>
    %199 = vector.broadcast %198 : vector<8x1xf32> to vector<8x32xf32>
    %200 = arith.mulf %190, %199 : vector<8x32xf32>
    %201 = vector.broadcast %183 : vector<1x32xf32> to vector<8x32xf32>
    %202 = arith.mulf %200, %201 : vector<8x32xf32>
    %203 = vector.broadcast %184 : vector<1x32xf32> to vector<8x32xf32>
    %204 = arith.addf %202, %203 : vector<8x32xf32>
    %c6 = arith.constant 6 : index
    %c0_133 = arith.constant 0 : index
    %c0_134 = arith.constant 0 : index
    %205 = vector.load %arg4[%c6, %c0_133, %c0_134] : memref<12x32x16xf32, #tpu.memory_space<vmem>>, vector<1x32x16xf32>
    %206 = vector.shape_cast %205 : vector<1x32x16xf32> to vector<32x16xf32>
    %cst_135 = arith.constant dense<0.000000e+00> : vector<8x16xf32>
    %207 = tpu.matmul %204, %206, %cst_135 {dimension_numbers = #tpu.dot_dimension_numbers<[1], [0], [0], [1], [0, 0, 1, 1], [], []>} : vector<8x32xf32>, vector<32x16xf32>, vector<8x16xf32> -> vector<8x16xf32>
    %c6_136 = arith.constant 6 : index
    %c0_137 = arith.constant 0 : index
    %c0_138 = arith.constant 0 : index
    %208 = vector.load %arg5[%c6_136, %c0_137, %c0_138] : memref<12x1x16xf32, #tpu.memory_space<vmem>>, vector<1x1x16xf32>
    %209 = vector.shape_cast %208 : vector<1x1x16xf32> to vector<1x16xf32>
    %210 = vector.broadcast %209 : vector<1x16xf32> to vector<8x16xf32>
    %211 = arith.addf %207, %210 : vector<8x16xf32>
    %c0_139 = arith.constant 0 : index
    %c0_140 = arith.constant 0 : index
    %c0_141 = arith.constant 0 : index
    %c0_142 = arith.constant 0 : index
    %212 = vector.load %arg12[%c0_139, %c0_140, %c0_141, %c0_142] : memref<3x2x8x16xf32, #tpu.memory_space<vmem>>, vector<1x1x8x16xf32>
    %213 = vector.shape_cast %212 : vector<1x1x8x16xf32> to vector<8x16xf32>
    %214 = vector.shape_cast %211 : vector<8x16xf32> to vector<1x1x8x16xf32>
    tpu.vector_store %arg12[%c0_139, %c0_140, %c0_141, %c0_142], %214 {strides = array<i32>} : memref<3x2x8x16xf32, #tpu.memory_space<vmem>>, vector<1x1x8x16xf32>,
    %c7 = arith.constant 7 : index
    %c0_143 = arith.constant 0 : index
    %c0_144 = arith.constant 0 : index
    %215 = vector.load %arg4[%c7, %c0_143, %c0_144] : memref<12x32x16xf32, #tpu.memory_space<vmem>>, vector<1x32x16xf32>
    %216 = vector.shape_cast %215 : vector<1x32x16xf32> to vector<32x16xf32>
    %cst_145 = arith.constant dense<0.000000e+00> : vector<8x16xf32>
    %217 = tpu.matmul %204, %216, %cst_145 {dimension_numbers = #tpu.dot_dimension_numbers<[1], [0], [0], [1], [0, 0, 1, 1], [], []>} : vector<8x32xf32>, vector<32x16xf32>, vector<8x16xf32> -> vector<8x16xf32>
    %c7_146 = arith.constant 7 : index
    %c0_147 = arith.constant 0 : index
    %c0_148 = arith.constant 0 : index
    %218 = vector.load %arg5[%c7_146, %c0_147, %c0_148] : memref<12x1x16xf32, #tpu.memory_space<vmem>>, vector<1x1x16xf32>
    %219 = vector.shape_cast %218 : vector<1x1x16xf32> to vector<1x16xf32>
    %220 = vector.broadcast %219 : vector<1x16xf32> to vector<8x16xf32>
    %221 = arith.addf %217, %220 : vector<8x16xf32>
    %c0_149 = arith.constant 0 : index
    %c1_150 = arith.constant 1 : index
    %c0_151 = arith.constant 0 : index
    %c0_152 = arith.constant 0 : index
    %222 = vector.load %arg12[%c0_149, %c1_150, %c0_151, %c0_152] : memref<3x2x8x16xf32, #tpu.memory_space<vmem>>, vector<1x1x8x16xf32>
    %223 = vector.shape_cast %222 : vector<1x1x8x16xf32> to vector<8x16xf32>
    %224 = vector.shape_cast %221 : vector<8x16xf32> to vector<1x1x8x16xf32>
    tpu.vector_store %arg12[%c0_149, %c1_150, %c0_151, %c0_152], %224 {strides = array<i32>} : memref<3x2x8x16xf32, #tpu.memory_space<vmem>>, vector<1x1x8x16xf32>,
    %c8 = arith.constant 8 : index
    %c0_153 = arith.constant 0 : index
    %c0_154 = arith.constant 0 : index
    %225 = vector.load %arg4[%c8, %c0_153, %c0_154] : memref<12x32x16xf32, #tpu.memory_space<vmem>>, vector<1x32x16xf32>
    %226 = vector.shape_cast %225 : vector<1x32x16xf32> to vector<32x16xf32>
    %cst_155 = arith.constant dense<0.000000e+00> : vector<8x16xf32>
    %227 = tpu.matmul %204, %226, %cst_155 {dimension_numbers = #tpu.dot_dimension_numbers<[1], [0], [0], [1], [0, 0, 1, 1], [], []>} : vector<8x32xf32>, vector<32x16xf32>, vector<8x16xf32> -> vector<8x16xf32>
    %c8_156 = arith.constant 8 : index
    %c0_157 = arith.constant 0 : index
    %c0_158 = arith.constant 0 : index
    %228 = vector.load %arg5[%c8_156, %c0_157, %c0_158] : memref<12x1x16xf32, #tpu.memory_space<vmem>>, vector<1x1x16xf32>
    %229 = vector.shape_cast %228 : vector<1x1x16xf32> to vector<1x16xf32>
    %230 = vector.broadcast %229 : vector<1x16xf32> to vector<8x16xf32>
    %231 = arith.addf %227, %230 : vector<8x16xf32>
    %c1_159 = arith.constant 1 : index
    %c0_160 = arith.constant 0 : index
    %c0_161 = arith.constant 0 : index
    %c0_162 = arith.constant 0 : index
    %232 = vector.load %arg12[%c1_159, %c0_160, %c0_161, %c0_162] : memref<3x2x8x16xf32, #tpu.memory_space<vmem>>, vector<1x1x8x16xf32>
    %233 = vector.shape_cast %232 : vector<1x1x8x16xf32> to vector<8x16xf32>
    %234 = vector.shape_cast %231 : vector<8x16xf32> to vector<1x1x8x16xf32>
    tpu.vector_store %arg12[%c1_159, %c0_160, %c0_161, %c0_162], %234 {strides = array<i32>} : memref<3x2x8x16xf32, #tpu.memory_space<vmem>>, vector<1x1x8x16xf32>,
    %c9 = arith.constant 9 : index
    %c0_163 = arith.constant 0 : index
    %c0_164 = arith.constant 0 : index
    %235 = vector.load %arg4[%c9, %c0_163, %c0_164] : memref<12x32x16xf32, #tpu.memory_space<vmem>>, vector<1x32x16xf32>
    %236 = vector.shape_cast %235 : vector<1x32x16xf32> to vector<32x16xf32>
    %cst_165 = arith.constant dense<0.000000e+00> : vector<8x16xf32>
    %237 = tpu.matmul %204, %236, %cst_165 {dimension_numbers = #tpu.dot_dimension_numbers<[1], [0], [0], [1], [0, 0, 1, 1], [], []>} : vector<8x32xf32>, vector<32x16xf32>, vector<8x16xf32> -> vector<8x16xf32>
    %c9_166 = arith.constant 9 : index
    %c0_167 = arith.constant 0 : index
    %c0_168 = arith.constant 0 : index
    %238 = vector.load %arg5[%c9_166, %c0_167, %c0_168] : memref<12x1x16xf32, #tpu.memory_space<vmem>>, vector<1x1x16xf32>
    %239 = vector.shape_cast %238 : vector<1x1x16xf32> to vector<1x16xf32>
    %240 = vector.broadcast %239 : vector<1x16xf32> to vector<8x16xf32>
    %241 = arith.addf %237, %240 : vector<8x16xf32>
    %c1_169 = arith.constant 1 : index
    %c1_170 = arith.constant 1 : index
    %c0_171 = arith.constant 0 : index
    %c0_172 = arith.constant 0 : index
    %242 = vector.load %arg12[%c1_169, %c1_170, %c0_171, %c0_172] : memref<3x2x8x16xf32, #tpu.memory_space<vmem>>, vector<1x1x8x16xf32>
    %243 = vector.shape_cast %242 : vector<1x1x8x16xf32> to vector<8x16xf32>
    %244 = vector.shape_cast %241 : vector<8x16xf32> to vector<1x1x8x16xf32>
    tpu.vector_store %arg12[%c1_169, %c1_170, %c0_171, %c0_172], %244 {strides = array<i32>} : memref<3x2x8x16xf32, #tpu.memory_space<vmem>>, vector<1x1x8x16xf32>,
    %c10 = arith.constant 10 : index
    %c0_173 = arith.constant 0 : index
    %c0_174 = arith.constant 0 : index
    %245 = vector.load %arg4[%c10, %c0_173, %c0_174] : memref<12x32x16xf32, #tpu.memory_space<vmem>>, vector<1x32x16xf32>
    %246 = vector.shape_cast %245 : vector<1x32x16xf32> to vector<32x16xf32>
    %cst_175 = arith.constant dense<0.000000e+00> : vector<8x16xf32>
    %247 = tpu.matmul %204, %246, %cst_175 {dimension_numbers = #tpu.dot_dimension_numbers<[1], [0], [0], [1], [0, 0, 1, 1], [], []>} : vector<8x32xf32>, vector<32x16xf32>, vector<8x16xf32> -> vector<8x16xf32>
    %c10_176 = arith.constant 10 : index
    %c0_177 = arith.constant 0 : index
    %c0_178 = arith.constant 0 : index
    %248 = vector.load %arg5[%c10_176, %c0_177, %c0_178] : memref<12x1x16xf32, #tpu.memory_space<vmem>>, vector<1x1x16xf32>
    %249 = vector.shape_cast %248 : vector<1x1x16xf32> to vector<1x16xf32>
    %250 = vector.broadcast %249 : vector<1x16xf32> to vector<8x16xf32>
    %251 = arith.addf %247, %250 : vector<8x16xf32>
    %c2_179 = arith.constant 2 : index
    %c0_180 = arith.constant 0 : index
    %c0_181 = arith.constant 0 : index
    %c0_182 = arith.constant 0 : index
    %252 = vector.load %arg12[%c2_179, %c0_180, %c0_181, %c0_182] : memref<3x2x8x16xf32, #tpu.memory_space<vmem>>, vector<1x1x8x16xf32>
    %253 = vector.shape_cast %252 : vector<1x1x8x16xf32> to vector<8x16xf32>
    %254 = vector.shape_cast %251 : vector<8x16xf32> to vector<1x1x8x16xf32>
    tpu.vector_store %arg12[%c2_179, %c0_180, %c0_181, %c0_182], %254 {strides = array<i32>} : memref<3x2x8x16xf32, #tpu.memory_space<vmem>>, vector<1x1x8x16xf32>,
    %c11 = arith.constant 11 : index
    %c0_183 = arith.constant 0 : index
    %c0_184 = arith.constant 0 : index
    %255 = vector.load %arg4[%c11, %c0_183, %c0_184] : memref<12x32x16xf32, #tpu.memory_space<vmem>>, vector<1x32x16xf32>
    %256 = vector.shape_cast %255 : vector<1x32x16xf32> to vector<32x16xf32>
    %cst_185 = arith.constant dense<0.000000e+00> : vector<8x16xf32>
    %257 = tpu.matmul %204, %256, %cst_185 {dimension_numbers = #tpu.dot_dimension_numbers<[1], [0], [0], [1], [0, 0, 1, 1], [], []>} : vector<8x32xf32>, vector<32x16xf32>, vector<8x16xf32> -> vector<8x16xf32>
    %c11_186 = arith.constant 11 : index
    %c0_187 = arith.constant 0 : index
    %c0_188 = arith.constant 0 : index
    %258 = vector.load %arg5[%c11_186, %c0_187, %c0_188] : memref<12x1x16xf32, #tpu.memory_space<vmem>>, vector<1x1x16xf32>
    %259 = vector.shape_cast %258 : vector<1x1x16xf32> to vector<1x16xf32>
    %260 = vector.broadcast %259 : vector<1x16xf32> to vector<8x16xf32>
    %261 = arith.addf %257, %260 : vector<8x16xf32>
    %c2_189 = arith.constant 2 : index
    %c1_190 = arith.constant 1 : index
    %c0_191 = arith.constant 0 : index
    %c0_192 = arith.constant 0 : index
    %262 = vector.load %arg12[%c2_189, %c1_190, %c0_191, %c0_192] : memref<3x2x8x16xf32, #tpu.memory_space<vmem>>, vector<1x1x8x16xf32>
    %263 = vector.shape_cast %262 : vector<1x1x8x16xf32> to vector<8x16xf32>
    %264 = vector.shape_cast %261 : vector<8x16xf32> to vector<1x1x8x16xf32>
    tpu.vector_store %arg12[%c2_189, %c1_190, %c0_191, %c0_192], %264 {strides = array<i32>} : memref<3x2x8x16xf32, #tpu.memory_space<vmem>>, vector<1x1x8x16xf32>,
    %c0_193 = arith.constant 0 : index
    %c0_194 = arith.constant 0 : index
    %c0_195 = arith.constant 0 : index
    %c0_196 = arith.constant 0 : index
    %265 = vector.load %arg12[%c0_193, %c0_194, %c0_195, %c0_196] : memref<3x2x8x16xf32, #tpu.memory_space<vmem>>, vector<1x2x8x16xf32>
    %266 = vector.shape_cast %265 : vector<1x2x8x16xf32> to vector<2x8x16xf32>
    %c1_197 = arith.constant 1 : index
    %c0_198 = arith.constant 0 : index
    %c0_199 = arith.constant 0 : index
    %c0_200 = arith.constant 0 : index
    %267 = vector.load %arg12[%c1_197, %c0_198, %c0_199, %c0_200] : memref<3x2x8x16xf32, #tpu.memory_space<vmem>>, vector<1x2x8x16xf32>
    %268 = vector.shape_cast %267 : vector<1x2x8x16xf32> to vector<2x8x16xf32>
    %c2_201 = arith.constant 2 : index
    %c0_202 = arith.constant 0 : index
    %c0_203 = arith.constant 0 : index
    %c0_204 = arith.constant 0 : index
    %269 = vector.load %arg12[%c2_201, %c0_202, %c0_203, %c0_204] : memref<3x2x8x16xf32, #tpu.memory_space<vmem>>, vector<1x2x8x16xf32>
    %270 = vector.shape_cast %269 : vector<1x2x8x16xf32> to vector<2x8x16xf32>
    "tpu.trace_start"() <{level = 10 : i32, message = "nsd,ntd->nst"}> : () -> ()
    %cst_205 = arith.constant dense<0.000000e+00> : vector<2x8x8xf32>
    %271 = tpu.matmul %266, %268, %cst_205 {dimension_numbers = #tpu.dot_dimension_numbers<[2], [2], [1], [1], [0, 0, 0, 1, 1, 1], [0], [0]>} : vector<2x8x16xf32>, vector<2x8x16xf32>, vector<2x8x8xf32> -> vector<2x8x8xf32>
    "tpu.trace_stop"() : () -> ()
    %272 = vector.broadcast %38 : vector<1x1x8xf32> to vector<2x8x8xf32>
    %273 = arith.addf %271, %272 : vector<2x8x8xf32>
    %cst_206 = arith.constant dense<0xFF800000> : vector<2x8xf32>
    %274 = vector.multi_reduction <maximumf>, %273, %cst_206 [2] : vector<2x8x8xf32> to vector<2x8xf32>
    %275 = vector.shape_cast %274 : vector<2x8xf32> to vector<2x8x1xf32>
    %276 = vector.broadcast %275 : vector<2x8x1xf32> to vector<2x8x8xf32>
    %277 = arith.subf %273, %276 : vector<2x8x8xf32>
    %278 = math.exp %277 : vector<2x8x8xf32>
    %cst_207 = arith.constant dense<0.000000e+00> : vector<2x8xf32>
    %279 = vector.multi_reduction <add>, %278, %cst_207 [2] : vector<2x8x8xf32> to vector<2x8xf32>
    %280 = vector.shape_cast %279 : vector<2x8xf32> to vector<2x8x1xf32>
    %281 = tpu.reciprocal %280 {approx = true} : vector<2x8x1xf32> -> vector<2x8x1xf32>
    %282 = vector.broadcast %281 : vector<2x8x1xf32> to vector<2x8x8xf32>
    %283 = arith.mulf %278, %282 : vector<2x8x8xf32>
    "tpu.trace_start"() <{level = 10 : i32, message = "nst,ntd->nsd"}> : () -> ()
    %cst_208 = arith.constant dense<0.000000e+00> : vector<2x8x16xf32>
    %284 = tpu.matmul %283, %270, %cst_208 {dimension_numbers = #tpu.dot_dimension_numbers<[2], [1], [1], [2], [0, 0, 0, 1, 1, 2], [0], [0]>} : vector<2x8x8xf32>, vector<2x8x16xf32>, vector<2x8x16xf32> -> vector<2x8x16xf32>
    "tpu.trace_stop"() : () -> ()
    %c144 = arith.constant 144 : index
    %c0_209 = arith.constant 0 : index
    %285 = vector.load %arg3[%c144, %c0_209] : memref<150x32xf32, #tpu.memory_space<vmem>>, vector<1x32xf32>
    %286 = vector.extract_strided_slice %284 {offsets = [0, 0, 0], sizes = [1, 8, 16], strides = [1, 1, 1]} : vector<2x8x16xf32> to vector<1x8x16xf32>
    %287 = vector.shape_cast %286 : vector<1x8x16xf32> to vector<8x16xf32>
    %c2_210 = arith.constant 2 : index
    %c0_211 = arith.constant 0 : index
    %c0_212 = arith.constant 0 : index
    %288 = vector.load %arg6[%c2_210, %c0_211, %c0_212] : memref<4x16x32xf32, #tpu.memory_space<vmem>>, vector<1x16x32xf32>
    %289 = vector.shape_cast %288 : vector<1x16x32xf32> to vector<16x32xf32>
    %cst_213 = arith.constant dense<0.000000e+00> : vector<8x32xf32>
    %290 = tpu.matmul %287, %289, %cst_213 {dimension_numbers = #tpu.dot_dimension_numbers<[1], [0], [0], [1], [0, 0, 1, 1], [], []>} : vector<8x16xf32>, vector<16x32xf32>, vector<8x32xf32> -> vector<8x32xf32>
    %291 = vector.broadcast %285 : vector<1x32xf32> to vector<8x32xf32>
    %292 = arith.addf %291, %290 : vector<8x32xf32>
    %293 = vector.extract_strided_slice %284 {offsets = [1, 0, 0], sizes = [1, 8, 16], strides = [1, 1, 1]} : vector<2x8x16xf32> to vector<1x8x16xf32>
    %294 = vector.shape_cast %293 : vector<1x8x16xf32> to vector<8x16xf32>
    %c3_214 = arith.constant 3 : index
    %c0_215 = arith.constant 0 : index
    %c0_216 = arith.constant 0 : index
    %295 = vector.load %arg6[%c3_214, %c0_215, %c0_216] : memref<4x16x32xf32, #tpu.memory_space<vmem>>, vector<1x16x32xf32>
    %296 = vector.shape_cast %295 : vector<1x16x32xf32> to vector<16x32xf32>
    %cst_217 = arith.constant dense<0.000000e+00> : vector<8x32xf32>
    %297 = tpu.matmul %294, %296, %cst_217 {dimension_numbers = #tpu.dot_dimension_numbers<[1], [0], [0], [1], [0, 0, 1, 1], [], []>} : vector<8x16xf32>, vector<16x32xf32>, vector<8x32xf32> -> vector<8x32xf32>
    %298 = arith.addf %292, %297 : vector<8x32xf32>
    %299 = arith.addf %298, %204 : vector<8x32xf32>
    %c145 = arith.constant 145 : index
    %c0_218 = arith.constant 0 : index
    %300 = vector.load %arg3[%c145, %c0_218] : memref<150x32xf32, #tpu.memory_space<vmem>>, vector<1x32xf32>
    %c146 = arith.constant 146 : index
    %c0_219 = arith.constant 0 : index
    %301 = vector.load %arg3[%c146, %c0_219] : memref<150x32xf32, #tpu.memory_space<vmem>>, vector<1x32xf32>
    %cst_220 = arith.constant dense<0.000000e+00> : vector<8xf32>
    %302 = vector.multi_reduction <add>, %299, %cst_220 [1] : vector<8x32xf32> to vector<8xf32>
    %303 = vector.shape_cast %302 : vector<8xf32> to vector<8x1xf32>
    %cst_221 = arith.constant 3.200000e+01 : f32
    %304 = vector.broadcast %cst_221 : f32 to vector<8x1xf32>
    %305 = arith.divf %303, %304 : vector<8x1xf32>
    %306 = vector.broadcast %305 : vector<8x1xf32> to vector<8x32xf32>
    %307 = arith.subf %299, %306 : vector<8x32xf32>
    %308 = arith.mulf %307, %307 : vector<8x32xf32>
    %cst_222 = arith.constant dense<0.000000e+00> : vector<8xf32>
    %309 = vector.multi_reduction <add>, %308, %cst_222 [1] : vector<8x32xf32> to vector<8xf32>
    %310 = vector.shape_cast %309 : vector<8xf32> to vector<8x1xf32>
    %cst_223 = arith.constant 3.200000e+01 : f32
    %311 = vector.broadcast %cst_223 : f32 to vector<8x1xf32>
    %312 = arith.divf %310, %311 : vector<8x1xf32>
    %cst_224 = arith.constant 9.99999996E-13 : f32
    %313 = vector.broadcast %cst_224 : f32 to vector<8x1xf32>
    %314 = arith.addf %312, %313 : vector<8x1xf32>
    %315 = math.rsqrt %314 : vector<8x1xf32>
    %316 = vector.broadcast %315 : vector<8x1xf32> to vector<8x32xf32>
    %317 = arith.mulf %307, %316 : vector<8x32xf32>
    %318 = vector.broadcast %300 : vector<1x32xf32> to vector<8x32xf32>
    %319 = arith.mulf %317, %318 : vector<8x32xf32>
    %320 = vector.broadcast %301 : vector<1x32xf32> to vector<8x32xf32>
    %321 = arith.addf %319, %320 : vector<8x32xf32>
    %c1_225 = arith.constant 1 : index
    %c0_226 = arith.constant 0 : index
    %c0_227 = arith.constant 0 : index
    %322 = vector.load %arg7[%c1_225, %c0_226, %c0_227] : memref<2x32x64xf32, #tpu.memory_space<vmem>>, vector<1x32x64xf32>
    %323 = vector.shape_cast %322 : vector<1x32x64xf32> to vector<32x64xf32>
    %cst_228 = arith.constant dense<0.000000e+00> : vector<8x64xf32>
    %324 = tpu.matmul %321, %323, %cst_228 {dimension_numbers = #tpu.dot_dimension_numbers<[1], [0], [0], [1], [0, 0, 1, 1], [], []>} : vector<8x32xf32>, vector<32x64xf32>, vector<8x64xf32> -> vector<8x64xf32>
    %c1_229 = arith.constant 1 : index
    %c0_230 = arith.constant 0 : index
    %c0_231 = arith.constant 0 : index
    %325 = vector.load %arg8[%c1_229, %c0_230, %c0_231] : memref<2x1x64xf32, #tpu.memory_space<vmem>>, vector<1x1x64xf32>
    %326 = vector.shape_cast %325 : vector<1x1x64xf32> to vector<1x64xf32>
    %327 = vector.broadcast %326 : vector<1x64xf32> to vector<8x64xf32>
    %328 = arith.addf %324, %327 : vector<8x64xf32>
    %329 = arith.mulf %328, %328 : vector<8x64xf32>
    %330 = arith.mulf %328, %329 : vector<8x64xf32>
    %cst_232 = arith.constant 4.471500e-02 : f32
    %331 = vector.broadcast %cst_232 : f32 to vector<8x64xf32>
    %332 = arith.mulf %331, %330 : vector<8x64xf32>
    %333 = arith.addf %328, %332 : vector<8x64xf32>
    %cst_233 = arith.constant 0.797884583 : f32
    %334 = vector.broadcast %cst_233 : f32 to vector<8x64xf32>
    %335 = arith.mulf %334, %333 : vector<8x64xf32>
    %336 = math.tanh %335 : vector<8x64xf32>
    %cst_234 = arith.constant 1.000000e+00 : f32
    %337 = vector.broadcast %cst_234 : f32 to vector<8x64xf32>
    %338 = arith.addf %337, %336 : vector<8x64xf32>
    %cst_235 = arith.constant 5.000000e-01 : f32
    %339 = vector.broadcast %cst_235 : f32 to vector<8x64xf32>
    %340 = arith.mulf %339, %338 : vector<8x64xf32>
    %341 = arith.mulf %328, %340 : vector<8x64xf32>
    %c1_236 = arith.constant 1 : index
    %c0_237 = arith.constant 0 : index
    %c0_238 = arith.constant 0 : index
    %342 = vector.load %arg9[%c1_236, %c0_237, %c0_238] : memref<2x64x32xf32, #tpu.memory_space<vmem>>, vector<1x64x32xf32>
    %343 = vector.shape_cast %342 : vector<1x64x32xf32> to vector<64x32xf32>
    %cst_239 = arith.constant dense<0.000000e+00> : vector<8x32xf32>
    %344 = tpu.matmul %341, %343, %cst_239 {dimension_numbers = #tpu.dot_dimension_numbers<[1], [0], [0], [1], [0, 0, 1, 1], [], []>} : vector<8x64xf32>, vector<64x32xf32>, vector<8x32xf32> -> vector<8x32xf32>
    %c147 = arith.constant 147 : index
    %c0_240 = arith.constant 0 : index
    %345 = vector.load %arg3[%c147, %c0_240] : memref<150x32xf32, #tpu.memory_space<vmem>>, vector<1x32xf32>
    %346 = vector.broadcast %345 : vector<1x32xf32> to vector<8x32xf32>
    %347 = arith.addf %344, %346 : vector<8x32xf32>
    %348 = arith.addf %347, %321 : vector<8x32xf32>
    %c148 = arith.constant 148 : index
    %c0_241 = arith.constant 0 : index
    %349 = vector.load %arg3[%c148, %c0_241] : memref<150x32xf32, #tpu.memory_space<vmem>>, vector<1x32xf32>
    %c149 = arith.constant 149 : index
    %c0_242 = arith.constant 0 : index
    %350 = vector.load %arg3[%c149, %c0_242] : memref<150x32xf32, #tpu.memory_space<vmem>>, vector<1x32xf32>
    %cst_243 = arith.constant dense<0.000000e+00> : vector<8xf32>
    %351 = vector.multi_reduction <add>, %348, %cst_243 [1] : vector<8x32xf32> to vector<8xf32>
    %352 = vector.shape_cast %351 : vector<8xf32> to vector<8x1xf32>
    %cst_244 = arith.constant 3.200000e+01 : f32
    %353 = vector.broadcast %cst_244 : f32 to vector<8x1xf32>
    %354 = arith.divf %352, %353 : vector<8x1xf32>
    %355 = vector.broadcast %354 : vector<8x1xf32> to vector<8x32xf32>
    %356 = arith.subf %348, %355 : vector<8x32xf32>
    %357 = arith.mulf %356, %356 : vector<8x32xf32>
    %cst_245 = arith.constant dense<0.000000e+00> : vector<8xf32>
    %358 = vector.multi_reduction <add>, %357, %cst_245 [1] : vector<8x32xf32> to vector<8xf32>
    %359 = vector.shape_cast %358 : vector<8xf32> to vector<8x1xf32>
    %cst_246 = arith.constant 3.200000e+01 : f32
    %360 = vector.broadcast %cst_246 : f32 to vector<8x1xf32>
    %361 = arith.divf %359, %360 : vector<8x1xf32>
    %cst_247 = arith.constant 9.99999996E-13 : f32
    %362 = vector.broadcast %cst_247 : f32 to vector<8x1xf32>
    %363 = arith.addf %361, %362 : vector<8x1xf32>
    %364 = math.rsqrt %363 : vector<8x1xf32>
    %365 = vector.broadcast %364 : vector<8x1xf32> to vector<8x32xf32>
    %366 = arith.mulf %356, %365 : vector<8x32xf32>
    %367 = vector.broadcast %349 : vector<1x32xf32> to vector<8x32xf32>
    %368 = arith.mulf %366, %367 : vector<8x32xf32>
    %369 = vector.broadcast %350 : vector<1x32xf32> to vector<8x32xf32>
    %370 = arith.addf %368, %369 : vector<8x32xf32>
    %c0_248 = arith.constant 0 : index
    %c0_249 = arith.constant 0 : index
    %371 = vector.load %arg10[%c0_248, %c0_249] : memref<33x128xf32, #tpu.memory_space<vmem>>, vector<32x128xf32>
    %c32 = arith.constant 32 : index
    %c0_250 = arith.constant 0 : index
    %372 = vector.load %arg10[%c32, %c0_250] : memref<33x128xf32, #tpu.memory_space<vmem>>, vector<1x128xf32>
    %373 = vector.extract_strided_slice %370 {offsets = [0, 0], sizes = [1, 32], strides = [1, 1]} : vector<8x32xf32> to vector<1x32xf32>
    %cst_251 = arith.constant dense<0.000000e+00> : vector<1x128xf32>
    %374 = tpu.matmul %373, %371, %cst_251 {dimension_numbers = #tpu.dot_dimension_numbers<[1], [0], [0], [1], [0, 0, 1, 1], [], []>} : vector<1x32xf32>, vector<32x128xf32>, vector<1x128xf32> -> vector<1x128xf32>
    %375 = arith.addf %374, %372 : vector<1x128xf32>
    %376 = vector.shape_cast %375 : vector<1x128xf32> to vector<1x1x128xf32>
    %c0_252 = arith.constant 0 : index
    %c0_253 = arith.constant 0 : index
    %c0_254 = arith.constant 0 : index
    %377 = vector.load %arg11[%c0_252, %c0_253, %c0_254] : memref<1x1x128xf32, #tpu.memory_space<vmem>>, vector<1x1x128xf32>
    tpu.vector_store %arg11[%c0_252, %c0_253, %c0_254], %376 {strides = array<i32>} : memref<1x1x128xf32, #tpu.memory_space<vmem>>, vector<1x1x128xf32>,
    return
  }
  func.func @transform_0(%arg0: i32) -> (i32, i32, i32) {
    %c0_i32 = arith.constant 0 : i32
    %c0_i32_0 = arith.constant 0 : i32
    %c0_i32_1 = arith.constant 0 : i32
    return %arg0, %c0_i32, %c0_i32_0 : i32, i32, i32
  }
  func.func @transform_1(%arg0: i32) -> (i32, i32, i32) {
    %c0_i32 = arith.constant 0 : i32
    %c0_i32_0 = arith.constant 0 : i32
    %c0_i32_1 = arith.constant 0 : i32
    return %arg0, %c0_i32, %c0_i32_0 : i32, i32, i32
  }
  func.func @transform_2(%arg0: i32) -> (i32, i32) {
    %c0_i32 = arith.constant 0 : i32
    %c0_i32_0 = arith.constant 0 : i32
    %c0_i32_1 = arith.constant 0 : i32
    return %c0_i32, %c0_i32_0 : i32, i32
  }
  func.func @transform_3(%arg0: i32) -> (i32, i32, i32) {
    %c0_i32 = arith.constant 0 : i32
    %c0_i32_0 = arith.constant 0 : i32
    %c0_i32_1 = arith.constant 0 : i32
    %c0_i32_2 = arith.constant 0 : i32
    return %c0_i32, %c0_i32_0, %c0_i32_1 : i32, i32, i32
  }
  func.func @transform_4(%arg0: i32) -> (i32, i32, i32) {
    %c0_i32 = arith.constant 0 : i32
    %c0_i32_0 = arith.constant 0 : i32
    %c0_i32_1 = arith.constant 0 : i32
    %c0_i32_2 = arith.constant 0 : i32
    return %c0_i32, %c0_i32_0, %c0_i32_1 : i32, i32, i32
  }
  func.func @transform_5(%arg0: i32) -> (i32, i32, i32) {
    %c0_i32 = arith.constant 0 : i32
    %c0_i32_0 = arith.constant 0 : i32
    %c0_i32_1 = arith.constant 0 : i32
    %c0_i32_2 = arith.constant 0 : i32
    return %c0_i32, %c0_i32_0, %c0_i32_1 : i32, i32, i32
  }
  func.func @transform_6(%arg0: i32) -> (i32, i32, i32) {
    %c0_i32 = arith.constant 0 : i32
    %c0_i32_0 = arith.constant 0 : i32
    %c0_i32_1 = arith.constant 0 : i32
    %c0_i32_2 = arith.constant 0 : i32
    return %c0_i32, %c0_i32_0, %c0_i32_1 : i32, i32, i32
  }
  func.func @transform_7(%arg0: i32) -> (i32, i32, i32) {
    %c0_i32 = arith.constant 0 : i32
    %c0_i32_0 = arith.constant 0 : i32
    %c0_i32_1 = arith.constant 0 : i32
    %c0_i32_2 = arith.constant 0 : i32
    return %c0_i32, %c0_i32_0, %c0_i32_1 : i32, i32, i32
  }
  func.func @transform_8(%arg0: i32) -> (i32, i32, i32) {
    %c0_i32 = arith.constant 0 : i32
    %c0_i32_0 = arith.constant 0 : i32
    %c0_i32_1 = arith.constant 0 : i32
    %c0_i32_2 = arith.constant 0 : i32
    return %c0_i32, %c0_i32_0, %c0_i32_1 : i32, i32, i32
  }
  func.func @transform_9(%arg0: i32) -> (i32, i32) {
    %c0_i32 = arith.constant 0 : i32
    %c0_i32_0 = arith.constant 0 : i32
    %c0_i32_1 = arith.constant 0 : i32
    return %c0_i32, %c0_i32_0 : i32, i32
  }
  func.func @transform_10(%arg0: i32) -> (i32, i32, i32) {
    %c0_i32 = arith.constant 0 : i32
    %c0_i32_0 = arith.constant 0 : i32
    %c0_i32_1 = arith.constant 0 : i32
    return %arg0, %c0_i32, %c0_i32_0 : i32, i32, i32
  }
}

</mosaic_0001>

<bundles_post_ra>
// kernel: kgbert_forward.1
= control target key start
LH: loop header
LB: loop body
LE: loop exit
PB: predicated region body
PF: predicated region fallthrough
CT: control target
= control target key end

     0   :  { %15 = vsyncpa [#allocation4], 0  ;;  %s4643_s0 = inlined_call_operand.vmem [shape: s32[2,8,1], index: 0, kind: input, shape index: {}]   ;;  %s4644_s1 = inlined_call_operand.vmem [shape: s32[2,1,8], index: 1, kind: input, shape index: {}]   ;;  %s4645_s2 = inlined_call_operand.vmem [shape: f32[150,32], index: 2, kind: input, shape index: {}]   ;;  %s4646_s3 = inlined_call_operand.vmem [shape: f32[12,32,16], index: 3, kind: input, shape index: {}]   ;;  %s4647_s4 = inlined_call_operand.vmem [shape: f32[12,1,16], index: 4, kind: input, shape index: {}]   ;;  %s4648_s5 = inlined_call_operand.vmem [shape: f32[4,16,32], index: 5, kind: input, shape index: {}]   ;;  %s4649_s6 = inlined_call_operand.vmem [shape: f32[2,32,64], index: 6, kind: input, shape index: {}]   ;;  %s4650_s7 = inlined_call_operand.vmem [shape: f32[2,1,64], index: 7, kind: input, shape index: {}]   ;;  %s4651_s8 = inlined_call_operand.vmem [shape: f32[2,64,32], index: 8, kind: input, shape index: {}]   ;;  %s4652_s9 = inlined_call_operand.vmem [shape: f32[33,128], index: 9, kind: input, shape index: {}]   ;;  %s4653_s10 = inlined_call_operand.hbm [shape: f32[2,1,128], index: 10, kind: output, shape index: {}]  }
   0x1   :  { %17 = vsyncpa [#allocation4 + $0x1], 0  ;;  %s3896_s13 = smov 0   ;;  %s3898_s14 = smov 0  }
   0x2   :  { %s3900_s15 = smov 0   ;;  %s3902_s16 = smov 0  }
   0x3 LB: > { %s3917_s17 = sadd.s32 4294967295, %s3834_s16   ;;  %s3111_s18 = sadd.s32 4294967294, %s3834_s16   ;;  %s3834_s16 = sphi %s3902_s16, %s4659_s16   ;;  %s3830_s15 = sphi %s3900_s15, %s4658_s15   ;;  %s3826_s14 = sphi %s3898_s14, %s4657_s14   ;;  %s3822_s13 = sphi %s3896_s13, %s4656_s13  }
   0x4   : > { %s3921_s19 = sadd.s32 1, %s3834_s16   ;;  %s250_s20 = sadd.s32 1, %s3830_s15 }
   0x5   : > { %s247_s21 = ssub.s32 %s3834_s16, %s3921_s19  ;;  %p260_p0 = scmp.ne.s32.totalorder %s3830_s15, %s3826_s14 }
   0x6   : > { %p248_p1 = scmp.eq.s32.totalorder %s247_s21, 0  ;;  %p261_p2 = scmp.eq.s32.totalorder %s3917_s17, 1 }
   0x7   : > { %p266_p3 = scmp.ne.s32.totalorder %s3826_s14, %s3822_s13  ;;  %p267_p4 = scmp.eq.s32.totalorder %s3111_s18, 1 }
   0x8   : > { %s3932_s22 = scalar_select %p248_p1, %s3830_s15, %s250_s20  }
   0x9   : > { %p3934_p5 = por %p261_p2, %p260_p0  ;;  %p3938_p6 = por %p267_p4, %p266_p3 }
   0xa   : > { %p3114_p7 = scmp.ge.s32.totalorder %s3834_s16, 1  ;;  %p322_p8 = scmp.lt.s32.totalorder %s3834_s16, 3 }
   0xc   : > { %p323_p9 = pnand %p3114_p7, %p322_p8 }
   0xd   : > { %p361_p10 = scmp.lt.s32.totalorder (!%p323_p9), %s3917_s17, 1  ;;  %s3840_s25 = smov (!%p323_p9), [#allocation3]  }
   0xe   : > { %326 = sbr.rel (%p323_p9) target bundleno = 5183 (0x143f), region = 60 }
  0x13   : > { %v392_v0 = vld [vmem:[%s4645_s2 + $0x78] sm:$0xff]  ;;  %v3836_v1 = vmov 0   ;;  %v3837_v2 = vmov 0.0   ;;  %v391_v3 = vld [vmem:[%s4645_s2 + $0x70] sm:$0xff]  ;;  %s3953_s29 = scalar_select %p361_p10, %s3917_s17, 1  ;;  %v390_v4 = vld [vmem:[%s4645_s2 + $0x68] sm:$0xff]  ;;  %v369_v19 = vlaneseq }
  0x14   : > { %3743 = vset.pattern.permute.xlu0 %v3836_v1  ;;  %3394 = vmatprep.subr.mxu0 %v3837_v2  ;;  %vm3838_vm0 = vmmov 0   ;;  %v389_v5 = vld [vmem:[%s4645_s2 + $0x60] sm:$0xff]  ;;  %v388_v7 = vld [vmem:[%s4645_s2 + $0x58] sm:$0xff]  ;;  %v387_v8 = vld [vmem:[%s4645_s2 + $0x50] sm:$0xff]  ;;  %v3839_v22 = vmov 1.0   ;;  %vm466_vm2 = vcmask 261120  }
  0x15   : > { %3395 = vmatpush3.msra.mxu0 %v392_v0  ;;  %3429 = vmatprep.subr.mxu1 %v3837_v2  ;;  %s3115_s12 = sshll.u32 %s3953_s29, 3  ;;  %v386_v9 = vld [vmem:[%s4645_s2 + $0x48] sm:$0xff]  ;;  %v385_v10 = vld [vmem:[%s4645_s2 + $0x40] sm:$0xff]  ;;  %v384_v11 = vld [vmem:[%s4645_s2 + $0x38] sm:$0xff]  ;;  %v370_v20 = vand.u32 127, %v369_v19  ;;  %s367_s27 = scalar_lea.vmem %s4644_s1, %s3953_s29  ;;  %vm579_vm3 = vcmask 130048  }
  0x16   : > { %3396 = vmatprep.subr.mxu0 %v3837_v2  ;;  %3426 = vmatprep.mubr.msk.f32.mxu0 %vm3838_vm0, %v3837_v2  ;;  %s364_s21 = scalar_lea.vmem %s4643_s0, %s3115_s12  ;;  %v383_v12 = vld [vmem:[%s4645_s2 + $0x30] sm:$0xff]  ;;  %v382_v13 = vld [vmem:[%s4645_s2 + $0x28] sm:$0xff]  ;;  %v381_v14 = vld [vmem:[%s4645_s2 + $0x20] sm:$0xff]  ;;  %vm1170_vm4 = vcmask 64512   ;;  %vm1629_vm5 = vcmask 523264  }
  0x17   : > { %3397 = vmatpush3.msra.mxu0 %v391_v3  ;;  %3437 = vmatprep.mubr.msk.f32.mxu1 %vm3838_vm0, %v3837_v2  ;;  %v368_v6 = vld [vmem:[%s364_s21] sm:$0xff]  ;;  %v380_v15 = vld [vmem:[%s4645_s2 + $0x18] sm:$0xff]  ;;  %v379_v16 = vld [vmem:[%s4645_s2 + $0x10] sm:$0xff]  ;;  %s359_s21 = sand.u32 1, %s3826_s14  }
  0x18   : > { %3398 = vmatprep.subr.mxu0 %v3837_v2  ;;  %372 = vperm.xlu0 %3743, %v368_v6   ;;  %v378_v17 = vld [vmem:[%s4645_s2 + $0x8] sm:$0xff]  ;;  %v377_v18 = vld [vmem:[%s4645_s2] sm:$0xff]  ;;  %v498_v33 = vld [vmem:[%s4646_s3 + $0x18] sm:$0xff]  ;;  %v1014_v6 = vshrl.u32 %v369_v19, 7  ;;  %s360_s28 = scalar_lea.vmem [#allocation3], %s359_s21  ;;  %s3035_s18 = scalar_lea.sflag [#allocation4], %s359_s21 }
  0x19   : > { %3399 = vmatpush3.msra.mxu0 %v390_v4  ;;  %v393_v23 = vld [vmem:[%s4645_s2 + $0x80] sm:$0xff]  ;;  %3430 = vmatpush3.msra.mxu1 %v498_v33  ;;  %v3146_v34 = vld [vmem:[%s4646_s3 + $0x98] sm:$0xff]  ;;  %v497_v35 = vld [vmem:[%s4646_s3 + $0x10] sm:$0xff]  ;;  %s3047_s30 = sshll.u32 %s360_s28, 4  ;;  %s3048_s30 = int_to_ptr.vmem [resolvable:$true] %s3047_s30 }
  0x1a   : > { %3400 = vmatprep.subr.mxu0 %v3837_v2  ;;  %3431 = vmatprep.subr.mxu1 %v3837_v2  ;;  %v3145_v36 = vld [vmem:[%s4646_s3 + $0x90] sm:$0xff]  ;;  %v496_v37 = vld [vmem:[%s4646_s3 + $0x8] sm:$0xff]  ;;  %v495_v39 = vld [vmem:[%s4646_s3] sm:$0xff]  ;;  %s3774_s20 = scalar_lea.vmem %s3048_s30, 16 }
  0x1b   : > { %3401 = vmatpush3.msra.mxu0 %v389_v5  ;;  %3432 = vmatpush3.msra.mxu1 %v497_v35  ;;  %v3144_v38 = vld [vmem:[%s4646_s3 + $0x88] sm:$0xff]  ;;  %v3143_v40 = vld [vmem:[%s4646_s3 + $0x80] sm:$0xff]  ;;  %v3125_v50 = vld [vmem:[%s4646_s3 + $0x38] sm:$0xff]  ;;  %p3775_p11 = scmp.ne.s32.totalorder %s3048_s30, %s3774_s20 }
  0x1c   : > { %3402 = vmatprep.subr.mxu0 %v3837_v2  ;;  %3433 = vmatprep.subr.mxu1 %v3837_v2  ;;  %v3118_v45 = vld [vmem:[%s4645_s2 + $0x88] ss:$0 sm:$0xff]  ;;  %v3119_v47 = vld [vmem:[%s4645_s2 + $0x89] ss:$0 sm:$0xff]  ;;  %v3124_v51 = vld [vmem:[%s4646_s3 + $0x30] sm:$0xff] }
  0x1d   : > { %3403 = vmatpush3.msra.mxu0 %v388_v7  ;;  %3434 = vmatpush3.msra.mxu1 %v496_v37  ;;  %v3123_v52 = vld [vmem:[%s4646_s3 + $0x28] sm:$0xff]  ;;  %v3122_v53 = vld [vmem:[%s4646_s3 + $0x20] sm:$0xff]  ;;  %v3132_v54 = vld [vmem:[%s4646_s3 + $0x58] sm:$0xff]  ;;  %p3776_p12 = pnand %p3775_p11, %p3934_p5 }
  0x1e   : > { %3404 = vmatprep.subr.mxu0 %v3837_v2  ;;  %3435 = vmatprep.subr.mxu1 %v3837_v2  ;;  %v3131_v55 = vld [vmem:[%s4646_s3 + $0x50] sm:$0xff]  ;;  %v3130_v56 = vld [vmem:[%s4646_s3 + $0x48] sm:$0xff]  ;;  %v3129_v57 = vld [vmem:[%s4646_s3 + $0x40] sm:$0xff] }
  0x1f   : > { %3405 = vmatpush3.msra.mxu0 %v387_v8  ;;  %3436 = vmatpush3.msra.mxu1 %v495_v39  ;;  %v3139_v58 = vld [vmem:[%s4646_s3 + $0x78] sm:$0xff]  ;;  %v3138_v59 = vld [vmem:[%s4646_s3 + $0x70] sm:$0xff]  ;;  %v3137_v60 = vld [vmem:[%s4646_s3 + $0x68] sm:$0xff]  ;;  %v1015_v8 = vsub.s32 0, %v1014_v6  ;;  %p3777_p13 = pneg %p3776_p12 }
  0x20   : > { %3406 = vmatprep.subr.mxu0 %v3837_v2  ;;  %3440 = vmatprep.subr.mxu1 %v3837_v2  ;;  %v3136_v61 = vld [vmem:[%s4646_s3 + $0x60] sm:$0xff]  ;;  %v3153_v62 = vld [vmem:[%s4646_s3 + $0xb8] sm:$0xff]  ;;  %v3152_v63 = vld [vmem:[%s4646_s3 + $0xb0] sm:$0xff] }
  0x21   : > { %3407 = vmatpush3.msra.mxu0 %v386_v9  ;;  %v3151_v0 = vld [vmem:[%s4646_s3 + $0xa8] sm:$0xff]  ;;  %v3150_v1 = vld [vmem:[%s4646_s3 + $0xa0] sm:$0xff] }
  0x22   : > { %3408 = vmatprep.subr.mxu0 %v3837_v2  ;;  %v491_v3 = vld [vmem:[%s367_s27] sm:$0x1]  ;;  %v3155_v33 = vld [vmem:[%s4647_s4 + $0x5] ss:$0 sm:$0xff]  ;;  %s3253_s27 = sshll.u32 %s3917_s17, 4  ;;  %s3778_s17 = sshll.u32 %s3840_s25, 4  ;;  %s3779_s17 = int_to_ptr.vmem [resolvable:$false] %s3778_s17 }
  0x23   : > { %3409 = vmatpush3.msra.mxu0 %v385_v10  ;;  %v492_v4 = vcvt.s32.f32 %v491_v3  ;;  %v3120_v10 = vld [vmem:[%s4647_s4] ss:$0 sm:$0xff]  ;;  %s4608_s29 = scalar_lea.hbm %s4653_s10, %s3253_s27  ;;  %s3780_s26 = scalar_lea.vmem %s3779_s17, 32 }
  0x24   : > { %3410 = vmatprep.subr.mxu0 %v3837_v2  ;;  %v1340_v3 = vld [vmem:[%s4648_s5] sm:$0xff]  ;;  %p3781_p0 = scmp.lt.s32.totalorder %s3048_s30, %s3779_s17  ;;  %p3782_p1 = scmp.lt.s32.totalorder %s3780_s26, %s3774_s20 }
  0x25   : > { %3411 = vmatpush3.msra.mxu0 %v384_v11  ;;  %v493_v5 = vsub.f32 1.0, %v492_v4  ;;  %v3148_v11 = vld [vmem:[%s4647_s4 + $0x4] ss:$0 sm:$0xff]  ;;  %v3166_v4 = vld [vmem:[%s4648_s5 + $0x18] sm:$0xff] }
  0x26   : > { %3412 = vmatprep.subr.mxu0 %v3837_v2  ;;  %p3783_p2 = por %p3782_p1, %p3781_p0 }
  0x27   : > { %3413 = vmatpush3.msra.mxu0 %v383_v12  ;;  %v494_v7 = vmul.f32 -1e+09, %v493_v5  ;;  %v3165_v5 = vld [vmem:[%s4648_s5 + $0x10] sm:$0xff] }
  0x28   : > { %3414 = vmatprep.subr.mxu0 %v3837_v2  ;;  %p3784_p3 = pnand %p3783_p2, %p3777_p13 }
  0x29   : > { %3415 = vmatpush3.msra.mxu0 %v382_v13  ;;  %v4163_v9 = vrot.slane %v494_v7, %v1015_v8 }
  0x2a   : > { %3416 = vmatprep.subr.mxu0 %v3837_v2 }
  0x2b   : > { %3417 = vmatpush3.msra.mxu0 %v381_v14 }
  0x2c   : > { %3418 = vmatprep.subr.mxu0 %v3837_v2 }
  0x2d   : > { %3419 = vmatpush3.msra.mxu0 %v380_v15 }
  0x2e   : > { %3420 = vmatprep.subr.mxu0 %v3837_v2 }
  0x2f   : > { %3421 = vmatpush3.msra.mxu0 %v379_v16 }
  0x30   : > { %3422 = vmatprep.subr.mxu0 %v3837_v2 }
  0x31   : > { %3423 = vmatpush3.msra.mxu0 %v378_v17 }
  0x32   : > { %3424 = vmatprep.subr.mxu0 %v3837_v2 }
  0x33   : > { %3425 = vmatpush3.msra.mxu0 %v377_v18  ;;  %v3127_v18 = vld [vmem:[%s4647_s4 + $0x1] ss:$0 sm:$0xff] }
  0x34   : > { %3473 = vmatprep.subr.mxu0 %v3837_v2 }
  0x93   : > { %v373_v21 = vpop.permute.xlu0 %372 }
  0x94   : > { %vm374_vm1 = vcmp.eq.s32.totalorder %v373_v21, %v370_v20 }
  0x95   : > { %3427 = vmatmul.mubr.msk.f32.vlgmr.msra.gmra.mxu0 %vm374_vm1, %v3839_v22  ;;  %v3134_v22 = vld [vmem:[%s4647_s4 + $0x2] ss:$0 sm:$0xff] }
  0x96   : > { %3481 = vmatprep.mubr.msk.f32.mxu0 %vm3838_vm0, %v3837_v2  ;;  %3474 = vmatpush3.msra.mxu0 %v3146_v34 }
  0x97   : > { %3475 = vmatprep.subr.mxu0 %v3837_v2 }
  0x98   : > { %3476 = vmatpush3.msra.mxu0 %v3145_v36 }
  0x99   : > { %3477 = vmatprep.subr.mxu0 %v3837_v2 }
  0x9a   : > { %3478 = vmatpush3.msra.mxu0 %v3144_v38 }
  0x9b   : > { %3479 = vmatprep.subr.mxu0 %v3837_v2 }
  0x9c   : > { %3480 = vmatpush3.msra.mxu0 %v3143_v40 }
  0x9d   : > { %3495 = vmatprep.subr.mxu0 %v3837_v2 }
 0x155   : > { %v460_v24 = vpop.f32.mrf.mxu0 }
 0x156   : > { %v461_v25 = vadd.f32 %v460_v24, %v393_v23 }
 0x157   : > { %v3428_v26 = vpop.f32.mrf.mxu0 }
 0x158   : > { %v467_v27 = vsel %vm466_vm2, %v461_v25, 0.0  ;;  %v3141_v26 = vld [vmem:[%s4647_s4 + $0x3] ss:$0 sm:$0xff] }
 0x159   : > { %468 = vadd.xlane.f32.xlu0 %v467_v27 }
 0x1e2   : > { %v469_v28 = vpop.xlane.xlu0 %468 }
 0x1e3   : > { %v471_v29 = vmul.f32 0.03125, %v469_v28 }
 0x1e5   : > { %v472_v30 = vsub.f32 %v461_v25, %v471_v29 }
 0x1e7   : > { %v473_v31 = vmul.f32 %v472_v30, %v472_v30 }
 0x1e9   : > { %v474_v32 = vsel %vm466_vm2, %v473_v31, 0.0 }
 0x1ea   : > { %475 = vadd.xlane.f32.xlu1 %v474_v32 }
 0x273   : > { %v476_v41 = vpop.xlane.xlu1 %475 }
 0x274   : > { %v477_v42 = vmul.f32 0.03125, %v476_v41 }
 0x276   : > { %v478_v43 = vadd.f32 1e-12, %v477_v42 }
 0x278   : > { %3744 = vrsqrt.f32 %v478_v43 }
 0x285   : > { %v3745_v44 = vpop.eup %3744 }
 0x286   : > { %v480_v46 = vmul.f32 %v3745_v44, %v472_v30 }
 0x288   : > { %v485_v48 = vmul.f32 %v3118_v45, %v480_v46 }
 0x28a   : > { %v4068_v49 = vadd.f32 %v3119_v47, %v485_v48 }
 0x28c   : > { %3438 = vmatmul.mubr.msk.f32.vlgmr.msra.gmra.mxu1 %vm466_vm2, %v4068_v49  ;;  %3482 = vmatmul.mubr.msk.f32.vlgmr.msra.gmra.mxu0 %vm466_vm2, %v4068_v49 }
 0x28d   : > { %3441 = vmatpush3.msra.mxu1 %v3125_v50  ;;  %3448 = vmatprep.mubr.msk.f32.mxu1 %vm3838_vm0, %v3837_v2 }
 0x28e   : > { %3442 = vmatprep.subr.mxu1 %v3837_v2  ;;  %3497 = vmatprep.mubr.msk.f32.mxu0 %vm3838_vm0, %v3837_v2 }
 0x28f   : > { %3443 = vmatpush3.msra.mxu1 %v3124_v51 }
 0x290   : > { %3444 = vmatprep.subr.mxu1 %v3837_v2 }
 0x291   : > { %3445 = vmatpush3.msra.mxu1 %v3123_v52 }
 0x292   : > { %3446 = vmatprep.subr.mxu1 %v3837_v2 }
 0x293   : > { %3447 = vmatpush3.msra.mxu1 %v3122_v53 }
 0x294   : > { %3449 = vmatmul.mubr.msk.f32.vlgmr.msra.gmra.mxu1 %vm466_vm2, %v4068_v49  ;;  %3451 = vmatprep.subr.mxu1 %v3837_v2 }
 0x295   : > { %3452 = vmatpush3.msra.mxu1 %v3132_v54  ;;  %3459 = vmatprep.mubr.msk.f32.mxu1 %vm3838_vm0, %v3837_v2 }
 0x296   : > { %3453 = vmatprep.subr.mxu1 %v3837_v2 }
 0x297   : > { %3454 = vmatpush3.msra.mxu1 %v3131_v55 }
 0x298   : > { %3455 = vmatprep.subr.mxu1 %v3837_v2 }
 0x299   : > { %3456 = vmatpush3.msra.mxu1 %v3130_v56 }
 0x29a   : > { %3457 = vmatprep.subr.mxu1 %v3837_v2 }
 0x29b   : > { %3458 = vmatpush3.msra.mxu1 %v3129_v57 }
 0x29c   : > { %3460 = vmatmul.mubr.msk.f32.vlgmr.msra.gmra.mxu1 %vm466_vm2, %v4068_v49  ;;  %3462 = vmatprep.subr.mxu1 %v3837_v2 }
 0x29d   : > { %3463 = vmatpush3.msra.mxu1 %v3139_v58  ;;  %3470 = vmatprep.mubr.msk.f32.mxu1 %vm3838_vm0, %v3837_v2 }
 0x29e   : > { %3464 = vmatprep.subr.mxu1 %v3837_v2 }
 0x29f   : > { %3465 = vmatpush3.msra.mxu1 %v3138_v59 }
 0x2a0   : > { %3466 = vmatprep.subr.mxu1 %v3837_v2 }
 0x2a1   : > { %3467 = vmatpush3.msra.mxu1 %v3137_v60 }
 0x2a2   : > { %3468 = vmatprep.subr.mxu1 %v3837_v2 }
 0x2a3   : > { %3469 = vmatpush3.msra.mxu1 %v3136_v61 }
 0x2a4   : > { %3471 = vmatmul.mubr.msk.f32.vlgmr.msra.gmra.mxu1 %vm466_vm2, %v4068_v49  ;;  %3484 = vmatprep.subr.mxu1 %v3837_v2 }
 0x2a5   : > { %3485 = vmatpush3.msra.mxu1 %v3153_v62  ;;  %3492 = vmatprep.mubr.msk.f32.mxu1 %vm3838_vm0, %v3837_v2 }
 0x2a6   : > { %3486 = vmatprep.subr.mxu1 %v3837_v2 }
 0x2a7   : > { %3487 = vmatpush3.msra.mxu1 %v3152_v63  ;;  %v1341_v63 = vld [vmem:[%s4648_s5 + $0x8] sm:$0xff] }
 0x2a8   : > { %3488 = vmatprep.subr.mxu1 %v3837_v2 }
 0x2a9   : > { %3489 = vmatpush3.msra.mxu1 %v3151_v0 }
 0x2aa   : > { %3490 = vmatprep.subr.mxu1 %v3837_v2 }
 0x2ab   : > { %3491 = vmatpush3.msra.mxu1 %v3150_v1 }
 0x2ac   : > { %3493 = vmatmul.mubr.msk.f32.vlgmr.msra.gmra.mxu1 %vm466_vm2, %v4068_v49  ;;  %3500 = vmatprep.subr.mxu1 %v3837_v2 }
 0x2ad   : > { %3502 = vmatprep.mubr.msk.f32.mxu1 %vm3838_vm0, %v3837_v2 }
 0x34c   : > { %v575_v12 = vpop.f32.mrf.mxu1  ;;  %v915_v13 = vpop.f32.mrf.mxu0 }
 0x34d   : > { %v576_v14 = vadd.f32 %v3120_v10, %v575_v12  ;;  %v916_v15 = vadd.f32 %v3148_v11, %v915_v13  ;;  %v3164_v13 = vld [vmem:[%s4645_s2 + $0x8a] ss:$0 sm:$0xff] }
 0x34e   : > { %v3439_v16 = vpop.f32.mrf.mxu1  ;;  %v3483_v17 = vpop.f32.mrf.mxu0 }
 0x34f   : > { %580 = vst.msk [vmem:[#allocation2] sm:$0xff] %vm579_vm3, %v576_v14  ;;  %920 = vst.msk [vmem:[#allocation2 + $0x20] sm:$0xff] %vm579_vm3, %v916_v15 }
 0x354   : > { %v660_v19 = vpop.f32.mrf.mxu1 }
 0x355   : > { %v661_v20 = vadd.f32 %v3127_v18, %v660_v19 }
 0x356   : > { %v3450_v21 = vpop.f32.mrf.mxu1  ;;  %v1006_v31 = vld [vmem:[#allocation2] sm:$0xff] }
 0x357   : > { %665 = vst.msk [vmem:[#allocation2 + $0x8] sm:$0xff] %vm579_vm3, %v661_v20  ;;  %v1010_v32 = vld [vmem:[#allocation2 + $0x20] sm:$0xff] }
 0x35c   : > { %v745_v23 = vpop.f32.mrf.mxu1 }
 0x35d   : > { %v746_v24 = vadd.f32 %v3134_v22, %v745_v23 }
 0x35e   : > { %v3461_v25 = vpop.f32.mrf.mxu1  ;;  %v1007_v38 = vld [vmem:[#allocation2 + $0x8] sm:$0xff] }
 0x35f   : > { %750 = vst.msk [vmem:[#allocation2 + $0x10] sm:$0xff] %vm579_vm3, %v746_v24  ;;  %v1526_v25 = vld [vmem:[%s4649_s6 + $0x18] sm:$0xff] }
 0x364   : > { %v830_v27 = vpop.f32.mrf.mxu1 }
 0x365   : > { %v831_v28 = vadd.f32 %v3141_v26, %v830_v27  ;;  %v1524_v26 = vld [vmem:[%s4649_s6 + $0x8] sm:$0xff]  ;;  %v1523_v27 = vld [vmem:[%s4649_s6] sm:$0xff] }
 0x366   : > { %v3472_v29 = vpop.f32.mrf.mxu1  ;;  %v1008_v30 = vld [vmem:[#allocation2 + $0x10] sm:$0xff] }
 0x367   : > { %835 = vst.msk [vmem:[#allocation2 + $0x18] sm:$0xff] %vm579_vm3, %v831_v28  ;;  %3496 = vmatpush3.xpose.msk.msra.mxu0 %vm579_vm3, %v1008_v30 }
 0x368   : > { %3505 = vmatprep.subr.mxu0 %v3837_v2 }
 0x36a   : > { %3498 = vmatmul.mubr.msk.f32.vlgmr.msra.gmra.mxu0 %vm579_vm3, %v1006_v31 }
 0x36b   : > { %3506 = vmatpush3.msra.mxu0 %v1010_v32  ;;  %3507 = vmatprep.mubr.msk.f32.mxu0 %vm3838_vm0, %v3837_v2  ;;  %v3168_v32 = vld [vmem:[%s4645_s2 + $0x8b] ss:$0 sm:$0xff] }
 0x36c   : > { %v1000_v34 = vpop.f32.mrf.mxu1  ;;  %3515 = vmatprep.subr.mxu0 %v3837_v2 }
 0x36d   : > { %v1001_v35 = vadd.f32 %v3155_v33, %v1000_v34  ;;  %v3169_v34 = vld [vmem:[%s4645_s2 + $0x8c] ss:$0 sm:$0xff] }
 0x36e   : > { %v3494_v36 = vpop.f32.mrf.mxu1  ;;  %v1009_v37 = vld [vmem:[#allocation2 + $0x18] sm:$0xff] }
 0x36f   : > { %1005 = vst.msk [vmem:[#allocation2 + $0x28] sm:$0xff] %vm579_vm3, %v1001_v35  ;;  %3501 = vmatpush3.xpose.msk.msra.mxu1 %vm579_vm3, %v1009_v37  ;;  %v1623_v37 = vld [vmem:[%s4651_s8 + $0x38] sm:$0xff] }
 0x370   : > { %3510 = vmatprep.subr.mxu1 %v3837_v2 }
 0x372   : > { %3503 = vmatmul.mubr.msk.f32.vlgmr.msra.gmra.mxu1 %vm579_vm3, %v1007_v38  ;;  %v1622_v38 = vld [vmem:[%s4651_s8 + $0x30] sm:$0xff] }
 0x373   : > { %3512 = vmatprep.mubr.msk.f32.mxu1 %vm3838_vm0, %v3837_v2 }
 0x376   : > { %v1011_v39 = vld [vmem:[#allocation2 + $0x28] sm:$0xff] }
 0x377   : > { %3511 = vmatpush3.msra.mxu1 %v1011_v39  ;;  %v1621_v39 = vld [vmem:[%s4651_s8 + $0x28] sm:$0xff] }
 0x378   : > { %3522 = vmatprep.subr.mxu1 %v3837_v2 }
 0x42a   : > { %v1090_v40 = vpop.f32.mrf.mxu0 }
 0x42b   : > { %v1091_v41 = vadd.f32 %v1090_v40, %v4163_v9  ;;  %v1620_v40 = vld [vmem:[%s4651_s8 + $0x20] sm:$0xff] }
 0x42c   : > { %v3499_v42 = vpop.f32.mrf.mxu0 }
 0x42d   : > { %v1171_v43 = vsel %vm1170_vm4, %v1091_v41, -inf  ;;  %v1618_v42 = vld [vmem:[%s4651_s8 + $0x10] sm:$0xff] }
 0x42e   : > { %1172 = vmax.xlane.f32.xlu1 %v1171_v43  ;;  %v1617_v43 = vld [vmem:[%s4651_s8 + $0x8] sm:$0xff] }
 0x432   : > { %v1166_v44 = vpop.f32.mrf.mxu1 }
 0x433   : > { %v1167_v45 = vadd.f32 %v1166_v44, %v4163_v9  ;;  %v1616_v44 = vld [vmem:[%s4651_s8] sm:$0xff] }
 0x434   : > { %v3504_v46 = vpop.f32.mrf.mxu1 }
 0x435   : > { %v1174_v47 = vsel %vm1170_vm4, %v1167_v45, -inf }
 0x436   : > { %1175 = vmax.xlane.f32.xlu1 %v1174_v47 }
 0x4b7   : > { %v1173_v48 = vpop.xlane.xlu1 %1172 }
 0x4b8   : > { %v1177_v50 = vsub.f32 %v1091_v41, %v1173_v48  ;;  %v1619_v41 = vld [vmem:[%s4651_s8 + $0x18] sm:$0xff] }
 0x4ba   : > { %v1179_v51 = vmul.f32 1.442695, %v1177_v50 }
 0x4bc   : > { %3746 = vpow2.f32 %v1179_v51 }
 0x4bf   : > { %v1176_v52 = vpop.xlane.xlu1 %1175 }
 0x4c0   : > { %v1178_v53 = vsub.f32 %v1167_v45, %v1176_v52  ;;  %v3170_v45 = vld [vmem:[%s4650_s7] ss:$0 sm:$0xff] }
 0x4c2   : > { %v1181_v54 = vmul.f32 1.442695, %v1178_v53 }
 0x4c4   : > { %3748 = vpow2.f32 %v1181_v54 }
 0x4c9   : > { %v3747_v55 = vpop.eup %3746 }
 0x4ca   : > { %v1183_v56 = vsel %vm1170_vm4, %v3747_v55, 0.0 }
 0x4cb   : > { %1184 = vadd.xlane.f32.xlu1 %v1183_v56 }
 0x4d1   : > { %v3749_v57 = vpop.eup %3748 }
 0x4d2   : > { %v1186_v58 = vsel %vm1170_vm4, %v3749_v57, 0.0 }
 0x4d3   : > { %1187 = vadd.xlane.f32.xlu1 %v1186_v58 }
 0x554   : > { %v1185_v59 = vpop.xlane.xlu1 %1184 }
 0x555   : > { %3750 = vrcp.f32 %v1185_v59  ;;  %v3172_v59 = vld [vmem:[%s4645_s2 + $0x8d] ss:$0 sm:$0xff] }
 0x55c   : > { %v1188_v60 = vpop.xlane.xlu1 %1187 }
 0x55d   : > { %3752 = vrcp.f32 %v1188_v60 }
 0x562   : > { %v3751_v61 = vpop.eup %3750 }
 0x563   : > { %v1191_v62 = vmul.f32 %v3751_v61, %v3747_v55 }
 0x565   : > { %3508 = vmatmul.mubr.msk.f32.vlgmr.msra.gmra.mxu0 %vm1170_vm4, %v1191_v62 }
 0x566   : > { %3516 = vmatpush3.msra.mxu0 %v1341_v63  ;;  %3519 = vmatprep.mubr.msk.f32.mxu0 %vm3838_vm0, %v3837_v2 }
 0x567   : > { %3517 = vmatprep.subr.mxu0 %v3837_v2 }
 0x568   : > { %3518 = vmatpush3.msra.mxu0 %v1340_v3 }
 0x569   : > { %3529 = vmatprep.subr.mxu0 %v3837_v2 }
 0x56a   : > { %v3753_v0 = vpop.eup %3752 }
 0x56b   : > { %v1192_v1 = vmul.f32 %v3753_v0, %v3749_v57 }
 0x56d   : > { %3513 = vmatmul.mubr.msk.f32.vlgmr.msra.gmra.mxu1 %vm1170_vm4, %v1192_v1 }
 0x56e   : > { %3526 = vmatprep.mubr.msk.f32.mxu1 %vm3838_vm0, %v3837_v2  ;;  %3523 = vmatpush3.msra.mxu1 %v3166_v4 }
 0x56f   : > { %3524 = vmatprep.subr.mxu1 %v3837_v2 }
 0x570   : > { %3525 = vmatpush3.msra.mxu1 %v3165_v5 }
 0x571   : > { %3540 = vmatprep.subr.mxu1 %v3837_v2 }
 0x625   : > { %v1262_v6 = vpop.f32.mrf.mxu0 }
 0x626   : > { %3520 = vmatmul.mubr.msk.f32.vlgmr.msra.gmra.mxu0 %vm579_vm3, %v1262_v6 }
 0x627   : > { %v3509_v7 = vpop.f32.mrf.mxu0  ;;  %3537 = vmatprep.mubr.msk.f32.mxu0 %vm3838_vm0, %v3837_v2  ;;  %3530 = vmatpush3.msra.mxu0 %v1526_v25  ;;  %v3186_v25 = vld [vmem:[%s4646_s3 + $0xf8] sm:$0xff] }
 0x628   : > { %3531 = vmatprep.subr.mxu0 %v3837_v2  ;;  %v3179_v7 = vld [vmem:[%s4646_s3 + $0xd8] sm:$0xff] }
 0x62d   : > { %v1335_v8 = vpop.f32.mrf.mxu1 }
 0x62e   : > { %3527 = vmatmul.mubr.msk.f32.vlgmr.msra.gmra.mxu1 %vm579_vm3, %v1335_v8  ;;  %v3193_v8 = vld [vmem:[%s4646_s3 + $0x118] sm:$0xff] }
 0x62f   : > { %v3514_v10 = vpop.f32.mrf.mxu1  ;;  %3556 = vmatprep.mubr.msk.f32.mxu1 %vm3838_vm0, %v3837_v2  ;;  %3541 = vmatpush3.msra.mxu1 %v1623_v37  ;;  %v3213_v37 = vld [vmem:[%s4646_s3 + $0x170] sm:$0xff] }
 0x630   : > { %3542 = vmatprep.subr.mxu1 %v3837_v2  ;;  %v3178_v10 = vld [vmem:[%s4646_s3 + $0xd0] sm:$0xff] }
 0x631   : > { %3543 = vmatpush3.msra.mxu1 %v1622_v38  ;;  %v3212_v38 = vld [vmem:[%s4646_s3 + $0x168] sm:$0xff] }
 0x632   : > { %3544 = vmatprep.subr.mxu1 %v3837_v2 }
 0x633   : > { %3545 = vmatpush3.msra.mxu1 %v1621_v39  ;;  %v3211_v39 = vld [vmem:[%s4646_s3 + $0x160] sm:$0xff] }
 0x634   : > { %3546 = vmatprep.subr.mxu1 %v3837_v2 }
 0x635   : > { %3547 = vmatpush3.msra.mxu1 %v1620_v40  ;;  %v3181_v40 = vld [vmem:[%s4647_s4 + $0x6] ss:$0 sm:$0xff] }
 0x636   : > { %3548 = vmatprep.subr.mxu1 %v3837_v2 }
 0x637   : > { %3549 = vmatpush3.msra.mxu1 %v1619_v41  ;;  %v3195_v41 = vld [vmem:[%s4647_s4 + $0x8] ss:$0 sm:$0xff] }
 0x638   : > { %3550 = vmatprep.subr.mxu1 %v3837_v2 }
 0x639   : > { %3551 = vmatpush3.msra.mxu1 %v1618_v42 }
 0x63a   : > { %3552 = vmatprep.subr.mxu1 %v3837_v2 }
 0x63b   : > { %3553 = vmatpush3.msra.mxu1 %v1617_v43 }
 0x63c   : > { %3554 = vmatprep.subr.mxu1 %v3837_v2 }
 0x63d   : > { %3555 = vmatpush3.msra.mxu1 %v1616_v44 }
 0x63e   : > { %3581 = vmatprep.subr.mxu1 %v3837_v2 }
 0x6e6   : > { %v1411_v11 = vpop.f32.mrf.mxu0 }
 0x6e7   : > { %v1419_v14 = vadd.f32 %v3164_v13, %v1411_v11  ;;  %v3192_v11 = vld [vmem:[%s4646_s3 + $0x110] sm:$0xff]  ;;  %v3191_v13 = vld [vmem:[%s4646_s3 + $0x108] sm:$0xff] }
 0x6e8   : > { %v3521_v12 = vpop.f32.mrf.mxu0 }
 0x6e9   : > { %v3177_v12 = vld [vmem:[%s4646_s3 + $0xc8] sm:$0xff] }
 0x6ee   : > { %v1492_v15 = vpop.f32.mrf.mxu1 }
 0x6ef   : > { %v1496_v16 = vadd.f32 %v1492_v15, %v1419_v14  ;;  %v3176_v14 = vld [vmem:[%s4646_s3 + $0xc0] sm:$0xff] }
 0x6f0   : > { %v3528_v17 = vpop.f32.mrf.mxu1  ;;  %v3190_v15 = vld [vmem:[%s4646_s3 + $0x100] sm:$0xff] }
 0x6f1   : > { %v1497_v18 = vadd.f32 %v1496_v16, %v4068_v49  ;;  %v1525_v49 = vld [vmem:[%s4649_s6 + $0x10] sm:$0xff] }
 0x6f2   : > { %3532 = vmatpush3.msra.mxu0 %v1525_v49  ;;  %v3207_v49 = vld [vmem:[%s4646_s3 + $0x158] sm:$0xff] }
 0x6f3   : > { %v1500_v19 = vsel %vm466_vm2, %v1497_v18, 0.0  ;;  %3533 = vmatprep.subr.mxu0 %v3837_v2 }
 0x6f4   : > { %1501 = vadd.xlane.f32.xlu1 %v1500_v19  ;;  %3534 = vmatpush3.msra.mxu0 %v1524_v26  ;;  %v3185_v26 = vld [vmem:[%s4646_s3 + $0xf0] sm:$0xff] }
 0x6f5   : > { %3535 = vmatprep.subr.mxu0 %v3837_v2 }
 0x6f6   : > { %3536 = vmatpush3.msra.mxu0 %v1523_v27  ;;  %v3206_v27 = vld [vmem:[%s4646_s3 + $0x150] sm:$0xff] }
 0x6f7   : > { %3559 = vmatprep.subr.mxu0 %v3837_v2 }
 0x77d   : > { %v1502_v20 = vpop.xlane.xlu1 %1501 }
 0x77e   : > { %v1503_v21 = vmul.f32 0.03125, %v1502_v20  ;;  %v3174_v20 = vld [vmem:[%s4645_s2 + $0x8e] ss:$0 sm:$0xff] }
 0x780   : > { %v1504_v22 = vsub.f32 %v1497_v18, %v1503_v21 }
 0x782   : > { %v1505_v23 = vmul.f32 %v1504_v22, %v1504_v22 }
 0x784   : > { %v1506_v24 = vsel %vm466_vm2, %v1505_v23, 0.0 }
 0x785   : > { %1507 = vadd.xlane.f32.xlu1 %v1506_v24 }
 0x80e   : > { %v1508_v28 = vpop.xlane.xlu1 %1507 }
 0x80f   : > { %v1509_v29 = vmul.f32 0.03125, %v1508_v28  ;;  %v3184_v28 = vld [vmem:[%s4646_s3 + $0xe8] sm:$0xff] }
 0x811   : > { %v1510_v30 = vadd.f32 1e-12, %v1509_v29  ;;  %v3205_v29 = vld [vmem:[%s4646_s3 + $0x148] sm:$0xff] }
 0x813   : > { %3754 = vrsqrt.f32 %v1510_v30  ;;  %v3183_v30 = vld [vmem:[%s4646_s3 + $0xe0] sm:$0xff] }
 0x820   : > { %v3755_v31 = vpop.eup %3754 }
 0x821   : > { %v1512_v33 = vmul.f32 %v3755_v31, %v1504_v22  ;;  %v3175_v22 = vld [vmem:[%s4645_s2 + $0x8f] ss:$0 sm:$0xff]  ;;  %v3204_v31 = vld [vmem:[%s4646_s3 + $0x140] sm:$0xff] }
 0x823   : > { %v1517_v35 = vmul.f32 %v3168_v32, %v1512_v33  ;;  %v3200_v32 = vld [vmem:[%s4646_s3 + $0x138] sm:$0xff]  ;;  %v3199_v33 = vld [vmem:[%s4646_s3 + $0x130] sm:$0xff] }
 0x825   : > { %v1522_v36 = vadd.f32 %v3169_v34, %v1517_v35  ;;  %v3198_v34 = vld [vmem:[%s4646_s3 + $0x128] sm:$0xff]  ;;  %v3197_v35 = vld [vmem:[%s4646_s3 + $0x120] sm:$0xff] }
 0x827   : > { %3538 = vmatmul.mubr.msk.f32.vlgmr.msra.gmra.mxu0 %vm466_vm2, %v1522_v36 }
 0x828   : > { %3567 = vmatprep.mubr.msk.f32.mxu0 %vm3838_vm0, %v3837_v2  ;;  %3560 = vmatpush3.msra.mxu0 %v3179_v7 }
 0x829   : > { %3561 = vmatprep.subr.mxu0 %v3837_v2 }
 0x82a   : > { %3562 = vmatpush3.msra.mxu0 %v3178_v10 }
 0x82b   : > { %3563 = vmatprep.subr.mxu0 %v3837_v2 }
 0x82c   : > { %3564 = vmatpush3.msra.mxu0 %v3177_v12 }
 0x82d   : > { %3565 = vmatprep.subr.mxu0 %v3837_v2 }
 0x82e   : > { %3566 = vmatpush3.msra.mxu0 %v3176_v14 }
 0x82f   : > { %3570 = vmatprep.subr.mxu0 %v3837_v2 }
 0x8e7   : > { %v1603_v46 = vpop.f32.mrf.mxu0 }
 0x8e8   : > { %v1604_v47 = vadd.f32 %v3170_v45, %v1603_v46 }
 0x8e9   : > { %v3539_v48 = vpop.f32.mrf.mxu0 }
 0x8ea   : > { %v1607_v50 = vmul.f32 %v1604_v47, %v1604_v47  ;;  %v3188_v48 = vld [vmem:[%s4647_s4 + $0x7] ss:$0 sm:$0xff] }
 0x8ec   : > { %v1608_v51 = vmul.f32 %v1607_v50, %v1604_v47  ;;  %v3209_v50 = vld [vmem:[%s4647_s4 + $0xa] ss:$0 sm:$0xff] }
 0x8ee   : > { %v1609_v52 = vmul.f32 0.044715, %v1608_v51 }
 0x8f0   : > { %v1610_v53 = vadd.f32 %v1609_v52, %v1604_v47 }
 0x8f2   : > { %v1611_v54 = vmul.f32 0.7978846, %v1610_v53 }
 0x8f4   : > { %3756 = vtanh.f32 %v1611_v54 }
 0x901   : > { %v3757_v55 = vpop.eup %3756 }
 0x902   : > { %v1613_v56 = vadd.f32 1.0, %v3757_v55 }
 0x904   : > { %v1614_v57 = vmul.f32 0.5, %v1613_v56 }
 0x906   : > { %v1615_v58 = vmul.f32 %v1614_v57, %v1604_v47 }
 0x908   : > { %3557 = vmatmul.mubr.msk.f32.vlgmr.msra.gmra.mxu1 %vm1629_vm5, %v1615_v58 }
 0x909   : > { %3589 = vmatprep.mubr.msk.f32.mxu1 %vm3838_vm0, %v3837_v2  ;;  %3582 = vmatpush3.msra.mxu1 %v3193_v8 }
 0x90a   : > { %3583 = vmatprep.subr.mxu1 %v3837_v2 }
 0x90b   : > { %3584 = vmatpush3.msra.mxu1 %v3192_v11 }
 0x90c   : > { %3585 = vmatprep.subr.mxu1 %v3837_v2 }
 0x90d   : > { %3586 = vmatpush3.msra.mxu1 %v3191_v13 }
 0x90e   : > { %3587 = vmatprep.subr.mxu1 %v3837_v2 }
 0x90f   : > { %3588 = vmatpush3.msra.mxu1 %v3190_v15 }
 0x910   : > { %3603 = vmatprep.subr.mxu1 %v3837_v2 }
 0x9c8   : > { %v1699_v60 = vpop.f32.mrf.mxu1 }
 0x9c9   : > { %v1700_v61 = vadd.f32 %v3172_v59, %v1699_v60  ;;  %v3202_v59 = vld [vmem:[%s4647_s4 + $0x9] ss:$0 sm:$0xff] }
 0x9ca   : > { %v3558_v62 = vpop.f32.mrf.mxu1 }
 0x9cb   : > { %v1703_v63 = vadd.f32 %v1700_v61, %v1522_v36  ;;  %v3214_v36 = vld [vmem:[%s4646_s3 + $0x178] sm:$0xff] }
 0x9cd   : > { %v1706_v0 = vsel %vm466_vm2, %v1703_v63, 0.0 }
 0x9ce   : > { %1707 = vadd.xlane.f32.xlu1 %v1706_v0  ;;  %v3216_v0 = vld [vmem:[%s4647_s4 + $0xb] ss:$0 sm:$0xff] }
 0xa57   : > { %v1708_v1 = vpop.xlane.xlu1 %1707 }
 0xa58   : > { %v1709_v3 = vmul.f32 0.03125, %v1708_v1 }
 0xa5a   : > { %v1710_v4 = vsub.f32 %v1703_v63, %v1709_v3 }
 0xa5c   : > { %v1711_v5 = vmul.f32 %v1710_v4, %v1710_v4 }
 0xa5e   : > { %v1712_v6 = vsel %vm466_vm2, %v1711_v5, 0.0 }
 0xa5f   : > { %1713 = vadd.xlane.f32.xlu1 %v1712_v6 }
 0xae8   : > { %v1714_v16 = vpop.xlane.xlu1 %1713 }
 0xae9   : > { %v1715_v17 = vmul.f32 0.03125, %v1714_v16 }
 0xaeb   : > { %v1716_v18 = vadd.f32 1e-12, %v1715_v17 }
 0xaed   : > { %3758 = vrsqrt.f32 %v1716_v18 }
 0xafa   : > { %v3759_v19 = vpop.eup %3758 }
 0xafb   : > { %v1718_v21 = vmul.f32 %v3759_v19, %v1710_v4 }
 0xafd   : > { %v1723_v23 = vmul.f32 %v3174_v20, %v1718_v21 }
 0xaff   : > { %v4347_v24 = vadd.f32 %v3175_v22, %v1723_v23 }
 0xb01   : > { %3568 = vmatmul.mubr.msk.f32.vlgmr.msra.gmra.mxu0 %vm466_vm2, %v4347_v24  ;;  %3590 = vmatmul.mubr.msk.f32.vlgmr.msra.gmra.mxu1 %vm466_vm2, %v4347_v24 }
 0xb02   : > { %3571 = vmatpush3.msra.mxu0 %v3186_v25  ;;  %3604 = vmatpush3.msra.mxu1 %v3207_v49 }
 0xb03   : > { %3572 = vmatprep.subr.mxu0 %v3837_v2  ;;  %3605 = vmatprep.subr.mxu1 %v3837_v2 }
 0xb04   : > { %3573 = vmatpush3.msra.mxu0 %v3185_v26  ;;  %3606 = vmatpush3.msra.mxu1 %v3206_v27 }
 0xb05   : > { %3574 = vmatprep.subr.mxu0 %v3837_v2  ;;  %3607 = vmatprep.subr.mxu1 %v3837_v2 }
 0xb06   : > { %3575 = vmatpush3.msra.mxu0 %v3184_v28  ;;  %3608 = vmatpush3.msra.mxu1 %v3205_v29  ;;  %v3225_v29 = vld [vmem:[%s4648_s5 + $0x28] sm:$0xff] }
 0xb07   : > { %3576 = vmatprep.subr.mxu0 %v3837_v2  ;;  %3609 = vmatprep.subr.mxu1 %v3837_v2 }
 0xb08   : > { %3577 = vmatpush3.msra.mxu0 %v3183_v30  ;;  %3578 = vmatprep.mubr.msk.f32.mxu0 %vm3838_vm0, %v3837_v2 }
 0xb09   : > { %3610 = vmatpush3.msra.mxu1 %v3204_v31  ;;  %3611 = vmatprep.mubr.msk.f32.mxu1 %vm3838_vm0, %v3837_v2 }
 0xb0a   : > { %3579 = vmatmul.mubr.msk.f32.vlgmr.msra.gmra.mxu0 %vm466_vm2, %v4347_v24  ;;  %3592 = vmatprep.subr.mxu0 %v3837_v2 }
 0xb0b   : > { %3612 = vmatmul.mubr.msk.f32.vlgmr.msra.gmra.mxu1 %vm466_vm2, %v4347_v24  ;;  %3593 = vmatpush3.msra.mxu0 %v3200_v32 }
 0xb0c   : > { %3594 = vmatprep.subr.mxu0 %v3837_v2  ;;  %3600 = vmatprep.mubr.msk.f32.mxu0 %vm3838_vm0, %v3837_v2 }
 0xb0d   : > { %3595 = vmatpush3.msra.mxu0 %v3199_v33  ;;  %3625 = vmatprep.subr.mxu1 %v3837_v2  ;;  %v3224_v33 = vld [vmem:[%s4648_s5 + $0x20] sm:$0xff] }
 0xb0e   : > { %3596 = vmatprep.subr.mxu0 %v3837_v2  ;;  %3627 = vmatprep.mubr.msk.f32.mxu1 %vm3838_vm0, %v3837_v2 }
 0xb0f   : > { %3597 = vmatpush3.msra.mxu0 %v3198_v34  ;;  %v3229_v34 = vld [vmem:[%s4648_s5 + $0x38] sm:$0xff] }
 0xb10   : > { %3598 = vmatprep.subr.mxu0 %v3837_v2 }
 0xb11   : > { %3599 = vmatpush3.msra.mxu0 %v3197_v35  ;;  %v3228_v35 = vld [vmem:[%s4648_s5 + $0x30] sm:$0xff] }
 0xb12   : > { %3601 = vmatmul.mubr.msk.f32.vlgmr.msra.gmra.mxu0 %vm466_vm2, %v4347_v24  ;;  %3614 = vmatprep.subr.mxu0 %v3837_v2 }
 0xb13   : > { %3615 = vmatpush3.msra.mxu0 %v3214_v36  ;;  %3622 = vmatprep.mubr.msk.f32.mxu0 %vm3838_vm0, %v3837_v2 }
 0xb14   : > { %3616 = vmatprep.subr.mxu0 %v3837_v2 }
 0xb15   : > { %3617 = vmatpush3.msra.mxu0 %v3213_v37 }
 0xb16   : > { %3618 = vmatprep.subr.mxu0 %v3837_v2 }
 0xb17   : > { %3619 = vmatpush3.msra.mxu0 %v3212_v38 }
 0xb18   : > { %3620 = vmatprep.subr.mxu0 %v3837_v2 }
 0xb19   : > { %3621 = vmatpush3.msra.mxu0 %v3211_v39 }
 0xb1a   : > { %3623 = vmatmul.mubr.msk.f32.vlgmr.msra.gmra.mxu0 %vm466_vm2, %v4347_v24  ;;  %3635 = vmatprep.subr.mxu0 %v3837_v2 }
 0xb1b   : > { %3637 = vmatprep.mubr.msk.f32.mxu0 %vm3838_vm0, %v3837_v2 }
 0xbc1   : > { %v1811_v42 = vpop.f32.mrf.mxu0  ;;  %v1979_v43 = vpop.f32.mrf.mxu1 }
 0xbc2   : > { %v1812_v44 = vadd.f32 %v3181_v40, %v1811_v42  ;;  %v1980_v45 = vadd.f32 %v3195_v41, %v1979_v43  ;;  %v3227_v42 = vld [vmem:[%s4645_s2 + $0x90] ss:$0 sm:$0xff] }
 0xbc3   : > { %v3569_v46 = vpop.f32.mrf.mxu0  ;;  %v3591_v47 = vpop.f32.mrf.mxu1 }
 0xbc4   : > { %1815 = vst.msk [vmem:[#allocation2] sm:$0xff] %vm579_vm3, %v1812_v44  ;;  %1983 = vst.msk [vmem:[#allocation2 + $0x10] sm:$0xff] %vm579_vm3, %v1980_v45 }
 0xbca   : > { %v1895_v51 = vpop.f32.mrf.mxu0 }
 0xbcb   : > { %v1896_v52 = vadd.f32 %v3188_v48, %v1895_v51  ;;  %v2147_v53 = vpop.f32.mrf.mxu1  ;;  %v2238_v54 = vld [vmem:[#allocation2 + $0x10] sm:$0xff]  ;;  %v2236_v58 = vld [vmem:[#allocation2] sm:$0xff] }
 0xbcc   : > { %v2148_v55 = vadd.f32 %v3209_v50, %v2147_v53  ;;  %v3580_v56 = vpop.f32.mrf.mxu0  ;;  %3626 = vmatpush3.xpose.msk.msra.mxu1 %vm579_vm3, %v2238_v54 }
 0xbcd   : > { %1899 = vst.msk [vmem:[#allocation2 + $0x8] sm:$0xff] %vm579_vm3, %v1896_v52  ;;  %v3613_v57 = vpop.f32.mrf.mxu1  ;;  %3630 = vmatprep.subr.mxu1 %v3837_v2  ;;  %v3235_v56 = vld [vmem:[%s4649_s6 + $0x30] sm:$0xff] }
 0xbce   : > { %2151 = vst.msk [vmem:[#allocation2 + $0x20] sm:$0xff] %vm579_vm3, %v2148_v55  ;;  %v3236_v55 = vld [vmem:[%s4649_s6 + $0x38] sm:$0xff]  ;;  %v3233_v57 = vld [vmem:[%s4649_s6 + $0x20] sm:$0xff] }
 0xbcf   : > { %3628 = vmatmul.mubr.msk.f32.vlgmr.msra.gmra.mxu1 %vm579_vm3, %v2236_v58 }
 0xbd0   : > { %3632 = vmatprep.mubr.msk.f32.mxu1 %vm3838_vm0, %v3837_v2 }
 0xbd2   : > { %v2063_v60 = vpop.f32.mrf.mxu0 }
 0xbd3   : > { %v2064_v61 = vadd.f32 %v3202_v59, %v2063_v60 }
 0xbd4   : > { %v3602_v62 = vpop.f32.mrf.mxu0  ;;  %v2237_v6 = vld [vmem:[#allocation2 + $0x8] sm:$0xff] }
 0xbd5   : > { %2067 = vst.msk [vmem:[#allocation2 + $0x18] sm:$0xff] %vm579_vm3, %v2064_v61  ;;  %v2240_v63 = vld [vmem:[#allocation2 + $0x20] sm:$0xff]  ;;  %v3231_v62 = vld [vmem:[%s4645_s2 + $0x91] ss:$0 sm:$0xff] }
 0xbd6   : > { %3636 = vmatpush3.msra.mxu0 %v2240_v63 }
 0xbd7   : > { %3645 = vmatprep.subr.mxu0 %v3837_v2 }
 0xbda   : > { %v2231_v1 = vpop.f32.mrf.mxu0 }
 0xbdb   : > { %v2232_v3 = vadd.f32 %v3216_v0, %v2231_v1  ;;  %v3232_v0 = vld [vmem:[%s4645_s2 + $0x92] ss:$0 sm:$0xff] }
 0xbdc   : > { %v3624_v4 = vpop.f32.mrf.mxu0  ;;  %v2239_v5 = vld [vmem:[#allocation2 + $0x18] sm:$0xff] }
 0xbdd   : > { %2235 = vst.msk [vmem:[#allocation2 + $0x28] sm:$0xff] %vm579_vm3, %v2232_v3  ;;  %3631 = vmatpush3.xpose.msk.msra.mxu1 %vm579_vm3, %v2239_v5  ;;  %v3247_v4 = vld [vmem:[%s4651_s8 + $0x78] sm:$0xff]  ;;  %v3246_v5 = vld [vmem:[%s4651_s8 + $0x70] sm:$0xff] }
 0xbde   : > { %3640 = vmatprep.subr.mxu1 %v3837_v2 }
 0xbe0   : > { %3633 = vmatmul.mubr.msk.f32.vlgmr.msra.gmra.mxu1 %vm579_vm3, %v2237_v6  ;;  %v3245_v6 = vld [vmem:[%s4651_s8 + $0x68] sm:$0xff] }
 0xbe1   : > { %3642 = vmatprep.mubr.msk.f32.mxu1 %vm3838_vm0, %v3837_v2 }
 0xbe4   : > { %v2241_v7 = vld [vmem:[#allocation2 + $0x28] sm:$0xff] }
 0xbe5   : > { %3641 = vmatpush3.msra.mxu1 %v2241_v7  ;;  %v3244_v7 = vld [vmem:[%s4651_s8 + $0x60] sm:$0xff] }
 0xbe6   : > { %3652 = vmatprep.subr.mxu1 %v3837_v2 }
 0xc8f   : > { %v2314_v8 = vpop.f32.mrf.mxu1 }
 0xc90   : > { %v2315_v10 = vadd.f32 %v2314_v8, %v4163_v9  ;;  %v3243_v8 = vld [vmem:[%s4651_s8 + $0x58] sm:$0xff] }
 0xc91   : > { %v3629_v11 = vpop.f32.mrf.mxu1 }
 0xc92   : > { %v2394_v12 = vsel %vm1170_vm4, %v2315_v10, -inf  ;;  %v3241_v11 = vld [vmem:[%s4651_s8 + $0x48] sm:$0xff] }
 0xc93   : > { %2395 = vmax.xlane.f32.xlu0 %v2394_v12  ;;  %v3240_v12 = vld [vmem:[%s4651_s8 + $0x40] sm:$0xff] }
 0xca0   : > { %v2390_v13 = vpop.f32.mrf.mxu1 }
 0xca1   : > { %v2391_v14 = vadd.f32 %v2390_v13, %v4163_v9  ;;  %v3238_v13 = vld [vmem:[%s4650_s7 + $0x1] ss:$0 sm:$0xff] }
 0xca2   : > { %v3634_v15 = vpop.f32.mrf.mxu1 }
 0xca3   : > { %v2397_v16 = vsel %vm1170_vm4, %v2391_v14, -inf }
 0xca4   : > { %2398 = vmax.xlane.f32.xlu1 %v2397_v16 }
 0xd1c   : > { %v2396_v17 = vpop.xlane.xlu0 %2395 }
 0xd1d   : > { %v2400_v18 = vsub.f32 %v2315_v10, %v2396_v17  ;;  %v3242_v10 = vld [vmem:[%s4651_s8 + $0x50] sm:$0xff] }
 0xd1f   : > { %v2402_v19 = vmul.f32 1.442695, %v2400_v18 }
 0xd21   : > { %3760 = vpow2.f32 %v2402_v19 }
 0xd2d   : > { %v2399_v20 = vpop.xlane.xlu1 %2398 }
 0xd2e   : > { %v3761_v21 = vpop.eup %3760  ;;  %v2401_v22 = vsub.f32 %v2391_v14, %v2399_v20 }
 0xd2f   : > { %v2406_v23 = vsel %vm1170_vm4, %v3761_v21, 0.0 }
 0xd30   : > { %v2404_v25 = vmul.f32 1.442695, %v2401_v22  ;;  %2407 = vadd.xlane.f32.xlu0 %v2406_v23 }
 0xd32   : > { %3762 = vpow2.f32 %v2404_v25 }
 0xd3f   : > { %v3763_v49 = vpop.eup %3762 }
 0xd40   : > { %v2409_v26 = vsel %vm1170_vm4, %v3763_v49, 0.0 }
 0xd41   : > { %2410 = vadd.xlane.f32.xlu1 %v2409_v26  ;;  %v3248_v26 = vld [vmem:[%s4645_s2 + $0x93] ss:$0 sm:$0xff] }
 0xdb9   : > { %v2408_v9 = vpop.xlane.xlu0 %2407 }
 0xdba   : > { %3764 = vrcp.f32 %v2408_v9 }
 0xdc7   : > { %v3765_v27 = vpop.eup %3764 }
 0xdc8   : > { %v2414_v28 = vmul.f32 %v3765_v27, %v3761_v21 }
 0xdca   : > { %v2411_v30 = vpop.xlane.xlu1 %2410  ;;  %3638 = vmatmul.mubr.msk.f32.vlgmr.msra.gmra.mxu0 %vm1170_vm4, %v2414_v28 }
 0xdcb   : > { %3766 = vrcp.f32 %v2411_v30  ;;  %3646 = vmatpush3.msra.mxu0 %v3225_v29  ;;  %3649 = vmatprep.mubr.msk.f32.mxu0 %vm3838_vm0, %v3837_v2 }
 0xdcc   : > { %3647 = vmatprep.subr.mxu0 %v3837_v2 }
 0xdcd   : > { %3648 = vmatpush3.msra.mxu0 %v3224_v33 }
 0xdce   : > { %3659 = vmatprep.subr.mxu0 %v3837_v2 }
 0xdd8   : > { %v3767_v31 = vpop.eup %3766 }
 0xdd9   : > { %v2415_v32 = vmul.f32 %v3767_v31, %v3763_v49 }
 0xddb   : > { %3643 = vmatmul.mubr.msk.f32.vlgmr.msra.gmra.mxu1 %vm1170_vm4, %v2415_v32 }
 0xddc   : > { %3656 = vmatprep.mubr.msk.f32.mxu1 %vm3838_vm0, %v3837_v2  ;;  %3653 = vmatpush3.msra.mxu1 %v3229_v34 }
 0xddd   : > { %3654 = vmatprep.subr.mxu1 %v3837_v2 }
 0xdde   : > { %3655 = vmatpush3.msra.mxu1 %v3228_v35 }
 0xddf   : > { %3670 = vmatprep.subr.mxu1 %v3837_v2 }
 0xe8a   : > { %v2485_v36 = vpop.f32.mrf.mxu0 }
 0xe8b   : > { %3650 = vmatmul.mubr.msk.f32.vlgmr.msra.gmra.mxu0 %vm579_vm3, %v2485_v36  ;;  %v2958_v36 = vld [vmem:[%s4652_s9 + $0x18] sm:$0xff] }
 0xe8c   : > { %v3639_v37 = vpop.f32.mrf.mxu0  ;;  %3667 = vmatprep.mubr.msk.f32.mxu0 %vm3838_vm0, %v3837_v2  ;;  %3660 = vmatpush3.msra.mxu0 %v3236_v55 }
 0xe8d   : > { %3661 = vmatprep.subr.mxu0 %v3837_v2  ;;  %v2957_v37 = vld [vmem:[%s4652_s9 + $0x10] sm:$0xff] }
 0xe8e   : > { %3662 = vmatpush3.msra.mxu0 %v3235_v56 }
 0xe8f   : > { %3663 = vmatprep.subr.mxu0 %v3837_v2 }
 0xe9b   : > { %v2558_v38 = vpop.f32.mrf.mxu1 }
 0xe9c   : > { %3657 = vmatmul.mubr.msk.f32.vlgmr.msra.gmra.mxu1 %vm579_vm3, %v2558_v38  ;;  %v2956_v38 = vld [vmem:[%s4652_s9 + $0x8] sm:$0xff] }
 0xe9d   : > { %v3644_v39 = vpop.f32.mrf.mxu1  ;;  %3686 = vmatprep.mubr.msk.f32.mxu1 %vm3838_vm0, %v3837_v2  ;;  %3671 = vmatpush3.msra.mxu1 %v3247_v4 }
 0xe9e   : > { %3672 = vmatprep.subr.mxu1 %v3837_v2  ;;  %v2955_v39 = vld [vmem:[%s4652_s9] sm:$0xff] }
 0xe9f   : > { %3673 = vmatpush3.msra.mxu1 %v3246_v5 }
 0xea0   : > { %3674 = vmatprep.subr.mxu1 %v3837_v2 }
 0xea1   : > { %3675 = vmatpush3.msra.mxu1 %v3245_v6 }
 0xea2   : > { %3676 = vmatprep.subr.mxu1 %v3837_v2 }
 0xea3   : > { %3677 = vmatpush3.msra.mxu1 %v3244_v7 }
 0xea4   : > { %3678 = vmatprep.subr.mxu1 %v3837_v2 }
 0xea5   : > { %3679 = vmatpush3.msra.mxu1 %v3243_v8 }
 0xea6   : > { %3680 = vmatprep.subr.mxu1 %v3837_v2 }
 0xea7   : > { %3681 = vmatpush3.msra.mxu1 %v3242_v10 }
 0xea8   : > { %3682 = vmatprep.subr.mxu1 %v3837_v2 }
 0xea9   : > { %3683 = vmatpush3.msra.mxu1 %v3241_v11 }
 0xeaa   : > { %3684 = vmatprep.subr.mxu1 %v3837_v2 }
 0xeab   : > { %3685 = vmatpush3.msra.mxu1 %v3240_v12 }
 0xf4b   : > { %v2635_v40 = vpop.f32.mrf.mxu0 }
 0xf4c   : > { %v2643_v43 = vadd.f32 %v3227_v42, %v2635_v40 }
 0xf4d   : > { %v3651_v41 = vpop.f32.mrf.mxu0 }
 0xf5c   : > { %v2716_v44 = vpop.f32.mrf.mxu1 }
 0xf5d   : > { %v2720_v45 = vadd.f32 %v2716_v44, %v2643_v43  ;;  %v3250_v44 = vld [vmem:[%s4645_s2 + $0x94] ss:$0 sm:$0xff] }
 0xf5e   : > { %v3658_v46 = vpop.f32.mrf.mxu1 }
 0xf5f   : > { %v2721_v47 = vadd.f32 %v2720_v45, %v4347_v24  ;;  %v3234_v24 = vld [vmem:[%s4649_s6 + $0x28] sm:$0xff]  ;;  %v3251_v46 = vld [vmem:[%s4645_s2 + $0x95] ss:$0 sm:$0xff] }
 0xf60   : > { %3664 = vmatpush3.msra.mxu0 %v3234_v24 }
 0xf61   : > { %v2724_v48 = vsel %vm466_vm2, %v2721_v47, 0.0  ;;  %3665 = vmatprep.subr.mxu0 %v3837_v2 }
 0xf62   : > { %2725 = vadd.xlane.f32.xlu0 %v2724_v48  ;;  %3666 = vmatpush3.msra.mxu0 %v3233_v57 }
 0xf63   : > { %3689 = vmatprep.subr.mxu0 %v3837_v2 }
 0xfeb   : > { %v2726_v50 = vpop.xlane.xlu0 %2725 }
 0xfec   : > { %v2727_v51 = vmul.f32 0.03125, %v2726_v50 }
 0xfee   : > { %v2728_v52 = vsub.f32 %v2721_v47, %v2727_v51 }
 0xff0   : > { %v2729_v53 = vmul.f32 %v2728_v52, %v2728_v52 }
 0xff2   : > { %v2730_v54 = vsel %vm466_vm2, %v2729_v53, 0.0 }
 0xff3   : > { %2731 = vadd.xlane.f32.xlu1 %v2730_v54 }
0x107c   : > { %v2732_v58 = vpop.xlane.xlu1 %2731 }
0x107d   : > { %v2733_v59 = vmul.f32 0.03125, %v2732_v58 }
0x107f   : > { %v2734_v60 = vadd.f32 1e-12, %v2733_v59 }
0x1081   : > { %3768 = vrsqrt.f32 %v2734_v60 }
0x108e   : > { %v3769_v61 = vpop.eup %3768 }
0x108f   : > { %v2736_v63 = vmul.f32 %v3769_v61, %v2728_v52 }
0x1091   : > { %v2741_v1 = vmul.f32 %v3231_v62, %v2736_v63 }
0x1093   : > { %v2746_v3 = vadd.f32 %v3232_v0, %v2741_v1 }
0x1095   : > { %3668 = vmatmul.mubr.msk.f32.vlgmr.msra.gmra.mxu0 %vm466_vm2, %v2746_v3 }
0x1096   : > { %3697 = vmatprep.mubr.msk.f32.mxu0 %vm3838_vm0, %v3837_v2  ;;  %3690 = vmatpush3.msra.mxu0 %v2958_v36 }
0x1097   : > { %3691 = vmatprep.subr.mxu0 %v3837_v2 }
0x1098   : > { %3692 = vmatpush3.msra.mxu0 %v2957_v37 }
0x1099   : > { %3693 = vmatprep.subr.mxu0 %v3837_v2 }
0x109a   : > { %3694 = vmatpush3.msra.mxu0 %v2956_v38 }
0x109b   : > { %3695 = vmatprep.subr.mxu0 %v3837_v2  ;;  %v2959_v2 = vld [vmem:[%s4652_s9 + $0x20] sm:$0x1] }
0x109c   : > { %3696 = vmatpush3.msra.mxu0 %v2955_v39 }
0x1155   : > { %v2829_v14 = vpop.f32.mrf.mxu0 }
0x1156   : > { %v2830_v15 = vadd.f32 %v3238_v13, %v2829_v14 }
0x1157   : > { %v3669_v16 = vpop.f32.mrf.mxu0 }
0x1158   : > { %v2833_v17 = vmul.f32 %v2830_v15, %v2830_v15 }
0x115a   : > { %v2834_v18 = vmul.f32 %v2833_v17, %v2830_v15 }
0x115c   : > { %v2835_v19 = vmul.f32 0.044715, %v2834_v18 }
0x115e   : > { %v2836_v20 = vadd.f32 %v2835_v19, %v2830_v15 }
0x1160   : > { %v2837_v21 = vmul.f32 0.7978846, %v2836_v20 }
0x1162   : > { %3770 = vtanh.f32 %v2837_v21 }
0x116f   : > { %v3771_v22 = vpop.eup %3770 }
0x1170   : > { %v2839_v23 = vadd.f32 1.0, %v3771_v22 }
0x1172   : > { %v2840_v25 = vmul.f32 0.5, %v2839_v23 }
0x1174   : > { %v2841_v49 = vmul.f32 %v2840_v25, %v2830_v15 }
0x1176   : > { %3687 = vmatmul.mubr.msk.f32.vlgmr.msra.gmra.mxu1 %vm1629_vm5, %v2841_v49 }
0x1236   : > { %v2925_v9 = vpop.f32.mrf.mxu1 }
0x1237   : > { %v2926_v27 = vadd.f32 %v3248_v26, %v2925_v9 }
0x1238   : > { %v3688_v28 = vpop.f32.mrf.mxu1 }
0x1239   : > { %v2929_v29 = vadd.f32 %v2926_v27, %v2746_v3 }
0x123b   : > { %v2932_v30 = vsel %vm466_vm2, %v2929_v29, 0.0 }
0x123c   : > { %2933 = vadd.xlane.f32.xlu0 %v2932_v30 }
0x12c5   : > { %v2934_v31 = vpop.xlane.xlu0 %2933 }
0x12c6   : > { %v2935_v32 = vmul.f32 0.03125, %v2934_v31 }
0x12c8   : > { %v2936_v33 = vsub.f32 %v2929_v29, %v2935_v32 }
0x12ca   : > { %v2937_v34 = vmul.f32 %v2936_v33, %v2936_v33 }
0x12cc   : > { %v2938_v35 = vsel %vm466_vm2, %v2937_v34, 0.0 }
0x12cd   : > { %2939 = vadd.xlane.f32.xlu1 %v2938_v35 }
0x1356   : > { %v2940_v40 = vpop.xlane.xlu1 %2939 }
0x1357   : > { %v2941_v41 = vmul.f32 0.03125, %v2940_v40 }
0x1359   : > { %v2942_v42 = vadd.f32 1e-12, %v2941_v41 }
0x135b   : > { %3772 = vrsqrt.f32 %v2942_v42 }
0x1368   : > { %v3773_v43 = vpop.eup %3772 }
0x1369   : > { %v2944_v45 = vmul.f32 %v3773_v43, %v2936_v33 }
0x136b   : > { %v2949_v47 = vmul.f32 %v3250_v44, %v2944_v45 }
0x136d   : > { %v2954_v48 = vadd.f32 %v3251_v46, %v2949_v47 }
0x136f   : > { %3698 = vmatmul.mubr.msk.f32.vlgmr.msra.gmra.mxu0 %vm466_vm2, %v2954_v48 }
0x142f   : > { %v3029_v50 = vpop.f32.mrf.mxu0 }
0x1430   : > { %v3030_v51 = vadd.f32 %v3029_v50, %v2959_v2 }
0x1431   : > { %v3699_v52 = vpop.f32.mrf.mxu0 }
0x1432   : > { %3033 = vst [vmem:[%s360_s28] sm:$0x1] %v3030_v51 }
0x1433   : > { %3787 = shalt.err (!%p3784_p3)
}
0x1434   : > { %s3788_s27 = scalar_lea.hbm %s4608_s29, 16  ;;  %s3792_s11 = scalar_lea.hbm %s4653_s10, 32 }
0x1435   : > { %p3789_p4 = scmp.ne.s32.totalorder %s4608_s29, %s3788_s27  ;;  %p3793_p9 = scmp.lt.s32.totalorder %s4608_s29, %s4653_s10 }
0x1436   : > { %p3794_p10 = scmp.lt.s32.totalorder %s3792_s11, %s3788_s27 }
0x1437   : > { %p3790_p7 = pnand %p3789_p4, %p3934_p5 }
0x1438   : > { %p3795_p11 = por %p3794_p10, %p3793_p9 }
0x1439   : > { %p3791_p8 = pneg %p3790_p7 }
0x143b   : > { %p3796_p12 = pnand %p3795_p11, %p3791_p8 }
0x143d   : > { %3799 = shalt.err (!%p3796_p12)
}
0x143e   : > { %3700 = dma.vmem_to_hbm [thread:$0]  (%p3934_p5), %s3048_s30, 16, %s4608_s29, %s3035_s18  }
0x143f PF: > { %p3706_p13 = scmp.ge.s32.totalorder %s3834_s16, 2  ;;  %s3059_s20 = sand.u32 1, %s3822_s13  }
0x1440   : > { %s3060_s17 = scalar_lea.sflag [#allocation4], %s3059_s20 }
0x1441   : > { %p3703_p0 = pnand %p3706_p13, %p3938_p6 }
0x1443   : > { %p3704_p1 = pneg %p3703_p0 }
0x1445   : > { %3817 = dma.done.wait (%p3704_p1), %s3060_s17, 16  }
0x1446   : > { %3819 = vsyncadd (%p3704_p1), %s3060_s17, 4294967280  ;;  %p20_p2 = scmp.ge.s32.totalorder %s3921_s19, 4   ;;  %s4656_s13 = smov %s3826_s14 }
0x1447   : > { %s4657_s14 = smov %s3830_s15  ;;  %s4658_s15 = smov %s3932_s22 }
0x1448   : > { %s4659_s16 = smov %s3921_s19  ;;  %22 = sbr.rel (!%p20_p2) target bundleno = 3 (0x3), region = 131 }
0x144d   :  { %3064 = vsyncpa [#allocation4], 1 }
0x144e   :  { %3066 = vsyncpa [#allocation4 + $0x1], 1 }

</bundles_post_ra>
